<compile_context>
chip_gen: v5e
topology: v5e:2x2
jax: 0.10.0
libtpu: 0.0.40
codegen_flags: <defaults>
</compile_context>

<pallas_src>
import functools

import jax
import jax.numpy as jnp
from jax.experimental import pallas as pl
from jax.experimental.pallas import tpu as pltpu

IN = 1
HID = 200
HID_PAD = 256          # MXU/bf16-friendly K (multiple of 128); padded rows of W2 are 0
OUT = 28 * 28          # 784 -- emitted directly, no column padding / wrapper slice


def _sigmoid(x):
    # Exact identity: sigmoid(x) = 0.5 * tanh(0.5 * x) + 0.5.
    # tanh is a single EUP push; the mul/adds ride otherwise-idle VALU slots.
    return 0.5 * jnp.tanh(0.5 * x) + 0.5


def generator_kernel(x_ref, w1_ref, b1_ref, w2_ref, b2_ref, out_ref):
    # ---- Layer 1: Linear(1 -> HID) + Sigmoid, on the VPU ------------------
    # K = 1, so this is a broadcast multiply -- no MXU round trip.
    x = x_ref[...]                                 # (TB, 1)       f32
    h = _sigmoid(x * w1_ref[...] + b1_ref[...])    # (TB, HID_PAD) f32

    # ---- Layer 2: Linear(HID -> OUT) + Sigmoid, on the MXU (bf16 x bf16) --
    # Padded K-rows of w2 are zero, so the sigmoid(0)=0.5 values living in
    # h's padded columns contribute nothing; accumulation stays in f32.
    o = jnp.dot(h.astype(jnp.bfloat16), w2_ref[...],
                preferred_element_type=jnp.float32)
    o = o + b2_ref[...]                            # (TB, OUT) f32
    out_ref[...] = _sigmoid(o).astype(out_ref.dtype)


def prepare_params(w1, b1, w2, b2):
    """Pad params to MXU-friendly shapes; W2 stored in bf16 (K padded only)."""
    w1p = jnp.zeros((1, HID_PAD), jnp.float32).at[:, :HID].set(w1)
    b1p = jnp.zeros((1, HID_PAD), jnp.float32).at[:, :HID].set(b1)
    w2p = jnp.zeros((HID_PAD, OUT), jnp.float32).at[:HID, :].set(w2)
    b2p = jnp.asarray(b2, jnp.float32).reshape(1, OUT)
    return w1p, b1p, w2p.astype(jnp.bfloat16), b2p


def _round_up(x, m):
    return ((x + m - 1) // m) * m


def pick_batch_tile(batch, tb_max=512):
    """Batch tile large enough to amortise grid overhead / fill the MXU,
    but keep >= 2 grid steps when possible so v7x can use both TensorCores."""
    tb_max = max(128, (tb_max // 128) * 128)
    b128 = _round_up(batch, 128)
    tb = min(tb_max, b128)
    if b128 // tb < 2 and b128 >= 256:
        tb = max(128, ((b128 // 2) // 128) * 128)
    return tb


@functools.partial(jax.jit, static_argnames=("tb", "out_dtype"))
def _generator_forward(x, w1p, b1p, w2p, b2p, *, tb, out_dtype):
    B = x.shape[0]
    Bp = _round_up(B, tb)
    if Bp != B:
        x = jnp.pad(x, ((0, Bp - B), (0, 0)))

    grid = (Bp // tb,)
    flops = 2 * Bp * HID_PAD * OUT + 3 * Bp * HID_PAD
    transcendentals = Bp * (HID_PAD + OUT)        # one tanh per sigmoid element
    bytes_accessed = (
        Bp * IN * 4 + w1p.size * 4 + b1p.size * 4
        + w2p.size * 2 + b2p.size * 4
        + Bp * OUT * jnp.dtype(out_dtype).itemsize
    )

    out = pl.pallas_call(
        generator_kernel,
        out_shape=jax.ShapeDtypeStruct((Bp, OUT), out_dtype),
        grid_spec=pltpu.PrefetchScalarGridSpec(
            num_scalar_prefetch=0,
            grid=grid,
            in_specs=[
                pl.BlockSpec((tb, IN), lambda i: (i, 0)),            # x, batch-tiled
                pl.BlockSpec((1, HID_PAD), lambda i: (0, 0)),        # w1, resident
                pl.BlockSpec((1, HID_PAD), lambda i: (0, 0)),        # b1, resident
                pl.BlockSpec((HID_PAD, OUT), lambda i: (0, 0)),      # w2, resident
                pl.BlockSpec((1, OUT), lambda i: (0, 0)),            # b2, resident
            ],
            out_specs=pl.BlockSpec((tb, OUT), lambda i: (i, 0)),
        ),
        compiler_params=pltpu.CompilerParams(
            dimension_semantics=("parallel",),
            vmem_limit_bytes=32 * 1024 * 1024,
        ),
        cost_estimate=pl.CostEstimate(
            flops=flops,
            transcendentals=transcendentals,
            bytes_accessed=bytes_accessed,
        ),
    )(x, w1p, b1p, w2p, b2p)

    if Bp != B:
        out = out[:B]
    return out


def generator_forward(x, w1p, b1p, w2p, b2p, *, tb=None, out_dtype=jnp.float32):
    """x: (B, 1) f32 -> (B, 784)."""
    if tb is None:
        tb = pick_batch_tile(x.shape[0])
    return _generator_forward(x, w1p, b1p, w2p, b2p, tb=tb, out_dtype=out_dtype)


def init_params(key):
    """Deterministic param init matching nn.Linear shapes (stored as (in, out))."""
    k1, k2, k3, k4 = jax.random.split(key, 4)
    lim1 = 1.0 / jnp.sqrt(jnp.float32(IN))
    lim2 = 1.0 / jnp.sqrt(jnp.float32(HID))
    w1 = jax.random.uniform(k1, (IN, HID), jnp.float32, -lim1, lim1)
    b1 = jax.random.uniform(k2, (1, HID), jnp.float32, -lim1, lim1)
    w2 = jax.random.uniform(k3, (HID, OUT), jnp.float32, -lim2, lim2)
    b2 = jax.random.uniform(k4, (1, OUT), jnp.float32, -lim2, lim2)
    return w1, b1, w2, b2


# TODO(synk): the PyTorch module's train()/SGD/plotting utilities are a host-side
# training loop and have no Pallas equivalent; only forward() is implemented.

if __name__ == "__main__":
    key = jax.random.PRNGKey(0)
    kp, kx = jax.random.split(key)
    w1, b1, w2, b2 = init_params(kp)
    w1p, b1p, w2p, b2p = prepare_params(w1, b1, w2, b2)

    # Generator in the original script is fed a random seed value: shape (B, 1).
    B = 256                       # -> tb=128, 2 grid steps (exercises the grid / v7x split)
    x = jax.random.uniform(kx, (B, IN), jnp.float32)

    out = generator_forward(x, w1p, b1p, w2p, b2p)
    out = jax.block_until_ready(out)

    # Sanity check against plain f32 JAX reference (bf16 MXU needs a loosened
    # tolerance; the tanh-form sigmoid itself is exact).
    ref = jax.nn.sigmoid(jax.nn.sigmoid(x @ w1 + b1) @ w2 + b2)
    assert out.shape == (B, OUT)
    assert jnp.allclose(out, ref, atol=2e-2, rtol=2e-2), (
        float(jnp.max(jnp.abs(out - ref))))

    print("KERNEL_OK")
</pallas_src>

<mosaic_0001>
module attributes {stable_mosaic.version = 11 : i64} {
  func.func @generator_kernel(%arg0: i32, %arg1: memref<128x1xf32, #tpu.memory_space<vmem>>, %arg2: memref<1x256xf32, #tpu.memory_space<vmem>>, %arg3: memref<1x256xf32, #tpu.memory_space<vmem>>, %arg4: memref<256x784xbf16, #tpu.memory_space<vmem>>, %arg5: memref<1x784xf32, #tpu.memory_space<vmem>>, %arg6: memref<128x784xf32, #tpu.memory_space<vmem>>) attributes {dimension_semantics = [#tpu.dimension_semantics<parallel>], iteration_bounds = array<i64: 2>, scalar_prefetch = 0 : i64, scratch_operands = 0 : i64, tpu.core_type = #tpu.core_type<tc>, window_params = [{transform_indices = @transform_0, window_bounds = array<i64: 128, 1>}, {pipeline_mode = #tpu.pipeline_mode<synchronous>, transform_indices = @transform_1, window_bounds = array<i64: 1, 256>}, {pipeline_mode = #tpu.pipeline_mode<synchronous>, transform_indices = @transform_2, window_bounds = array<i64: 1, 256>}, {pipeline_mode = #tpu.pipeline_mode<synchronous>, transform_indices = @transform_3, window_bounds = array<i64: 256, 784>}, {pipeline_mode = #tpu.pipeline_mode<synchronous>, transform_indices = @transform_4, window_bounds = array<i64: 1, 784>}, {transform_indices = @transform_5, window_bounds = array<i64: 128, 784>}]} {
    %c0 = arith.constant 0 : index
    %c0_0 = arith.constant 0 : index
    %0 = vector.load %arg1[%c0, %c0_0] : memref<128x1xf32, #tpu.memory_space<vmem>>, vector<128x1xf32>
    %c0_1 = arith.constant 0 : index
    %c0_2 = arith.constant 0 : index
    %1 = vector.load %arg2[%c0_1, %c0_2] : memref<1x256xf32, #tpu.memory_space<vmem>>, vector<1x256xf32>
    %2 = vector.broadcast %0 : vector<128x1xf32> to vector<128x256xf32>
    %3 = vector.broadcast %1 : vector<1x256xf32> to vector<128x256xf32>
    %4 = arith.mulf %2, %3 : vector<128x256xf32>
    %c0_3 = arith.constant 0 : index
    %c0_4 = arith.constant 0 : index
    %5 = vector.load %arg3[%c0_3, %c0_4] : memref<1x256xf32, #tpu.memory_space<vmem>>, vector<1x256xf32>
    %6 = vector.broadcast %5 : vector<1x256xf32> to vector<128x256xf32>
    %7 = arith.addf %4, %6 : vector<128x256xf32>
    %cst = arith.constant 5.000000e-01 : f32
    %8 = vector.broadcast %cst : f32 to vector<128x256xf32>
    %9 = arith.mulf %8, %7 : vector<128x256xf32>
    %10 = math.tanh %9 : vector<128x256xf32>
    %cst_5 = arith.constant 5.000000e-01 : f32
    %11 = vector.broadcast %cst_5 : f32 to vector<128x256xf32>
    %12 = arith.mulf %11, %10 : vector<128x256xf32>
    %cst_6 = arith.constant 5.000000e-01 : f32
    %13 = vector.broadcast %cst_6 : f32 to vector<128x256xf32>
    %14 = arith.addf %12, %13 : vector<128x256xf32>
    %15 = arith.truncf %14 : vector<128x256xf32> to vector<128x256xbf16>
    %c0_7 = arith.constant 0 : index
    %c0_8 = arith.constant 0 : index
    %16 = vector.load %arg4[%c0_7, %c0_8] : memref<256x784xbf16, #tpu.memory_space<vmem>>, vector<256x784xbf16>
    %cst_9 = arith.constant dense<0.000000e+00> : vector<128x784xf32>
    %17 = tpu.matmul %15, %16, %cst_9 {dimension_numbers = #tpu.dot_dimension_numbers<[1], [0], [0], [1], [0, 0, 1, 1], [], []>} : vector<128x256xbf16>, vector<256x784xbf16>, vector<128x784xf32> -> vector<128x784xf32>
    %c0_10 = arith.constant 0 : index
    %c0_11 = arith.constant 0 : index
    %18 = vector.load %arg5[%c0_10, %c0_11] : memref<1x784xf32, #tpu.memory_space<vmem>>, vector<1x784xf32>
    %19 = vector.broadcast %18 : vector<1x784xf32> to vector<128x784xf32>
    %20 = arith.addf %17, %19 : vector<128x784xf32>
    %cst_12 = arith.constant 5.000000e-01 : f32
    %21 = vector.broadcast %cst_12 : f32 to vector<128x784xf32>
    %22 = arith.mulf %21, %20 : vector<128x784xf32>
    %23 = math.tanh %22 : vector<128x784xf32>
    %cst_13 = arith.constant 5.000000e-01 : f32
    %24 = vector.broadcast %cst_13 : f32 to vector<128x784xf32>
    %25 = arith.mulf %24, %23 : vector<128x784xf32>
    %cst_14 = arith.constant 5.000000e-01 : f32
    %26 = vector.broadcast %cst_14 : f32 to vector<128x784xf32>
    %27 = arith.addf %25, %26 : vector<128x784xf32>
    %c0_15 = arith.constant 0 : index
    %c0_16 = arith.constant 0 : index
    %28 = vector.load %arg6[%c0_15, %c0_16] : memref<128x784xf32, #tpu.memory_space<vmem>>, vector<128x784xf32>
    tpu.vector_store %arg6[%c0_15, %c0_16], %27 {strides = array<i32>} : memref<128x784xf32, #tpu.memory_space<vmem>>, vector<128x784xf32>,
    return
  }
  func.func @transform_0(%arg0: i32) -> (i32, i32) {
    %c0_i32 = arith.constant 0 : i32
    %c0_i32_0 = arith.constant 0 : i32
    return %arg0, %c0_i32 : i32, i32
  }
  func.func @transform_1(%arg0: i32) -> (i32, i32) {
    %c0_i32 = arith.constant 0 : i32
    %c0_i32_0 = arith.constant 0 : i32
    %c0_i32_1 = arith.constant 0 : i32
    return %c0_i32, %c0_i32_0 : i32, i32
  }
  func.func @transform_2(%arg0: i32) -> (i32, i32) {
    %c0_i32 = arith.constant 0 : i32
    %c0_i32_0 = arith.constant 0 : i32
    %c0_i32_1 = arith.constant 0 : i32
    return %c0_i32, %c0_i32_0 : i32, i32
  }
  func.func @transform_3(%arg0: i32) -> (i32, i32) {
    %c0_i32 = arith.constant 0 : i32
    %c0_i32_0 = arith.constant 0 : i32
    %c0_i32_1 = arith.constant 0 : i32
    return %c0_i32, %c0_i32_0 : i32, i32
  }
  func.func @transform_4(%arg0: i32) -> (i32, i32) {
    %c0_i32 = arith.constant 0 : i32
    %c0_i32_0 = arith.constant 0 : i32
    %c0_i32_1 = arith.constant 0 : i32
    return %c0_i32, %c0_i32_0 : i32, i32
  }
  func.func @transform_5(%arg0: i32) -> (i32, i32) {
    %c0_i32 = arith.constant 0 : i32
    %c0_i32_0 = arith.constant 0 : i32
    return %arg0, %c0_i32 : i32, i32
  }
}

</mosaic_0001>

<bundles_post_ra>
// kernel: _generator_forward.1
= control target key start
LH: loop header
LB: loop body
LE: loop exit
PB: predicated region body
PF: predicated region fallthrough
CT: control target
= control target key end

     0   :  { %s3499_s18 = smov 0   ;;  %s4745_s0 = inlined_call_operand.vmem [shape: f32[256,1], index: 0, kind: input, shape index: {}]   ;;  %s4746_s1 = inlined_call_operand.vmem [shape: f32[1,256], index: 1, kind: input, shape index: {}]   ;;  %s4747_s2 = inlined_call_operand.vmem [shape: f32[1,256], index: 2, kind: input, shape index: {}]   ;;  %s4748_s3 = inlined_call_operand.vmem [shape: bf16[256,784], index: 3, kind: input, shape index: {}]   ;;  %s4749_s4 = inlined_call_operand.vmem [shape: f32[1,784], index: 4, kind: input, shape index: {}]   ;;  %s4750_s5 = inlined_call_operand.vmem [shape: f32[256,784], index: 5, kind: output, shape index: {}]  }
   0x1 LB: > { %s2571_s19 = sadd.s32 4294967295, %s3466_s18   ;;  %p2575_p0 = scmp.ge.s32.totalorder %s3466_s18, 1  ;;  %s3466_s18 = sphi %s3499_s18, %s15_s18  }
   0x2   : > { %p188_p1 = scmp.lt.s32.totalorder %s3466_s18, 3 }
   0x4   : > { %p189_p2 = pnand %p2575_p0, %p188_p1 }
   0x5   : > { %s2576_s20 = sshll.u32 (!%p189_p2), %s2571_s19, 4 }
   0x6   : > { %192 = sbr.rel (%p189_p2) target bundleno = 747 (0x2eb), region = 40  ;;  %p218_p3 = scmp.lt.s32.totalorder (!%p189_p2), %s2576_s20, 31 }
   0xb   : > { %v3468_v0 = vmov 0   ;;  %s4752_s20 = smov (!%p218_p3, %s2576_s20), 31  ;;  %v2778_v17 = vld [vmem:[%s4748_s3 + $0x188] sm:$0xf]  ;;  %v3082_v18 = vld [vmem:[%s4748_s3 + $0x1a0] sm:$0xf0] }
   0xc   : > { %3169 = vset.pattern.permute.xlu1 %v3468_v0  ;;  %3168 = vset.pattern.permute.xlu0 %v3468_v0  ;;  %s2577_s21 = sshll.u32 %s4752_s20, 3  ;;  %v3002_v19 = vld [vmem:[%s4748_s3 + $0x348] sm:$0xf]  ;;  %v2779_v20 = vor.u32 %v3082_v18, %v2778_v17  ;;  %v3138_v21 = vld [vmem:[%s4748_s3 + $0x360] sm:$0xf0]  ;;  %s3158_s16 = smul.u32 56, %s4752_s20 }
   0xd   : > { %3170 = vset.pattern.permute.xlu2 %v3468_v0  ;;  %s3513_s24 = scalar_lea.vmem %s4745_s0, %s2577_s21  ;;  %v3003_v22 = vor.u32 %v3138_v21, %v3002_v19  ;;  %v2750_v23 = vld [vmem:[%s4748_s3 + $0x150] sm:$0xf]  ;;  %v3075_v24 = vld [vmem:[%s4748_s3 + $0x168] sm:$0xf0]  ;;  %v2722_v29 = vld [vmem:[%s4748_s3 + $0x118] sm:$0xf] }
   0xe   : > { %v238_v1 = vld [vmem:[%s3513_s24 + $0x40] sm:$0xff]  ;;  %v240_v3 = vld [vmem:[%s3513_s24 + $0x50] sm:$0xff]  ;;  %v239_v4 = vld [vmem:[%s3513_s24 + $0x48] sm:$0xff]  ;;  %1266 = vmatpush.bf16.msra.mxu0 %v2779_v20  ;;  %3142 = vmatpush.bf16.msra.mxu2 %v2779_v20  ;;  %v2751_v26 = vor.u32 %v3075_v24, %v2750_v23  ;;  %s4165_s20 = scalar_lea.vmem %s4750_s5, %s3158_s16  ;;  %vm2406_vm0 = vcmask 130048  }
   0xf   : > { %v230_v2 = vld [vmem:[%s3513_s24] sm:$0xff]  ;;  %289 = vperm.xlu0 %3168, %v238_v1   ;;  %299 = vperm.xlu2 %3170, %v240_v3   ;;  %v231_v5 = vld [vmem:[%s3513_s24 + $0x8] sm:$0xff]  ;;  %v241_v6 = vld [vmem:[%s3513_s24 + $0x58] sm:$0xff] }
  0x10   : > { %249 = vperm.xlu1 %3169, %v230_v2   ;;  %v232_v7 = vld [vmem:[%s3513_s24 + $0x10] sm:$0xff]  ;;  %v233_v8 = vld [vmem:[%s3513_s24 + $0x18] sm:$0xff]  ;;  %v242_v9 = vld [vmem:[%s3513_s24 + $0x60] sm:$0xff]  ;;  %1315 = vmatpush.bf16.msra.mxu1 %v3003_v22 }
  0x11   : > { %v243_v10 = vld [vmem:[%s3513_s24 + $0x68] sm:$0xff]  ;;  %v234_v11 = vld [vmem:[%s3513_s24 + $0x20] sm:$0xff]  ;;  %v244_v13 = vld [vmem:[%s3513_s24 + $0x70] sm:$0xff]  ;;  %3150 = vmatpush.bf16.msra.mxu3 %v3003_v22 }
  0x12   : > { %v235_v12 = vld [vmem:[%s3513_s24 + $0x28] sm:$0xff]  ;;  %v245_v14 = vld [vmem:[%s3513_s24 + $0x78] sm:$0xff]  ;;  %v236_v15 = vld [vmem:[%s3513_s24 + $0x30] sm:$0xff]  ;;  %1267 = vmatpush.bf16.msra.mxu0 %v2751_v26  ;;  %3143 = vmatpush.bf16.msra.mxu2 %v2751_v26 }
  0x13   : > { %v237_v16 = vld [vmem:[%s3513_s24 + $0x38] sm:$0xff]  ;;  %v2974_v25 = vld [vmem:[%s4748_s3 + $0x310] sm:$0xf]  ;;  %v3131_v27 = vld [vmem:[%s4748_s3 + $0x328] sm:$0xf0] }
  0x14   : > { %v2975_v28 = vor.u32 %v3131_v27, %v2974_v25  ;;  %v3068_v30 = vld [vmem:[%s4748_s3 + $0x130] sm:$0xf0]  ;;  %v2946_v31 = vld [vmem:[%s4748_s3 + $0x2d8] sm:$0xf]  ;;  %v2694_v35 = vld [vmem:[%s4748_s3 + $0xe0] sm:$0xf] }
  0x15   : > { %v2723_v32 = vor.u32 %v3068_v30, %v2722_v29  ;;  %v3124_v33 = vld [vmem:[%s4748_s3 + $0x2f0] sm:$0xf0]  ;;  %v3061_v36 = vld [vmem:[%s4748_s3 + $0xf8] sm:$0xf0]  ;;  %v2918_v37 = vld [vmem:[%s4748_s3 + $0x2a0] sm:$0xf] }
  0x16   : > { %1316 = vmatpush.bf16.msra.mxu1 %v2975_v28  ;;  %3151 = vmatpush.bf16.msra.mxu3 %v2975_v28  ;;  %v2947_v34 = vor.u32 %v3124_v33, %v2946_v31  ;;  %v2695_v38 = vor.u32 %v3061_v36, %v2694_v35  ;;  %v3117_v39 = vld [vmem:[%s4748_s3 + $0x2b8] sm:$0xf0]  ;;  %v2666_v42 = vld [vmem:[%s4748_s3 + $0xa8] sm:$0xf]  ;;  %v3054_v43 = vld [vmem:[%s4748_s3 + $0xc0] sm:$0xf0] }
  0x17   : > { %294 = vperm.xlu0 %3168, %v239_v4   ;;  %304 = vperm.xlu2 %3170, %v241_v6   ;;  %v2919_v41 = vor.u32 %v3117_v39, %v2918_v37  ;;  %v2890_v44 = vld [vmem:[%s4748_s3 + $0x268] sm:$0xf]  ;;  %v2667_v45 = vor.u32 %v3054_v43, %v2666_v42  ;;  %v3110_v46 = vld [vmem:[%s4748_s3 + $0x280] sm:$0xf0]  ;;  %v2638_v48 = vld [vmem:[%s4748_s3 + $0x70] sm:$0xf] }
  0x18   : > { %254 = vperm.xlu1 %3169, %v231_v5   ;;  %1268 = vmatpush.bf16.msra.mxu0 %v2723_v32  ;;  %v2891_v47 = vor.u32 %v3110_v46, %v2890_v44  ;;  %v3047_v49 = vld [vmem:[%s4748_s3 + $0x88] sm:$0xf0]  ;;  %v2862_v50 = vld [vmem:[%s4748_s3 + $0x230] sm:$0xf]  ;;  %v246_v54 = vld [vmem:[%s4746_s1] sm:$0x3] }
  0x19   : > { %3144 = vmatpush.bf16.msra.mxu2 %v2723_v32  ;;  %v2639_v51 = vor.u32 %v3047_v49, %v2638_v48  ;;  %v3103_v52 = vld [vmem:[%s4748_s3 + $0x248] sm:$0xf0]  ;;  %v2610_v56 = vld [vmem:[%s4748_s3 + $0x38] sm:$0xf]  ;;  %v3040_v57 = vld [vmem:[%s4748_s3 + $0x50] sm:$0xf0] }
  0x1a   : > { %1317 = vmatpush.bf16.msra.mxu1 %v2947_v34  ;;  %3152 = vmatpush.bf16.msra.mxu3 %v2947_v34  ;;  %v2863_v53 = vor.u32 %v3103_v52, %v2862_v50  ;;  %v2611_v58 = vor.u32 %v3040_v57, %v2610_v56  ;;  %v2834_v59 = vld [vmem:[%s4748_s3 + $0x1f8] sm:$0xf]  ;;  %v3096_v60 = vld [vmem:[%s4748_s3 + $0x210] sm:$0xf0]  ;;  %v3618_v61 = vperm.slane %v246_v54, 0  ;;  %v3623_v0 = vperm.slane %v246_v54, 1 }
  0x1b   : > { %v2835_v62 = vor.u32 %v3096_v60, %v2834_v59  ;;  %v364_v63 = vld [vmem:[%s4747_s2] sm:$0x3]  ;;  %v3033_v3 = vld [vmem:[%s4748_s3 + $0x18] sm:$0xf0] }
  0x1c   : > { %1269 = vmatpush.bf16.msra.mxu0 %v2695_v38  ;;  %v2582_v2 = vld [vmem:[%s4748_s3] sm:$0xf]  ;;  %v3635_v5 = vperm.slane %v364_v63, 0 }
  0x1d   : > { %3145 = vmatpush.bf16.msra.mxu2 %v2695_v38  ;;  %v2806_v4 = vld [vmem:[%s4748_s3 + $0x1c0] sm:$0xf] }
  0x1e   : > { %1318 = vmatpush.bf16.msra.mxu1 %v2919_v41  ;;  %3153 = vmatpush.bf16.msra.mxu3 %v2919_v41 }
  0x1f   : > { %259 = vperm.xlu0 %3168, %v232_v7   ;;  %309 = vperm.xlu2 %3170, %v242_v9   ;;  %v2583_v7 = vor.u32 %v3033_v3, %v2582_v2 }
  0x20   : > { %264 = vperm.xlu1 %3169, %v233_v8   ;;  %1270 = vmatpush.bf16.msra.mxu0 %v2667_v45  ;;  %v3089_v8 = vld [vmem:[%s4748_s3 + $0x1d8] sm:$0xf0] }
  0x21   : > { %3146 = vmatpush.bf16.msra.mxu2 %v2667_v45 }
  0x22   : > { %1319 = vmatpush.bf16.msra.mxu1 %v2891_v47  ;;  %3154 = vmatpush.bf16.msra.mxu3 %v2891_v47 }
  0x24   : > { %1271 = vmatpush.bf16.msra.mxu0 %v2639_v51 }
  0x25   : > { %3147 = vmatpush.bf16.msra.mxu2 %v2639_v51 }
  0x26   : > { %1320 = vmatpush.bf16.msra.mxu1 %v2863_v53  ;;  %3155 = vmatpush.bf16.msra.mxu3 %v2863_v53 }
  0x27   : > { %314 = vperm.xlu0 %3168, %v243_v10   ;;  %274 = vperm.xlu2 %3170, %v235_v12   ;;  %v2807_v10 = vor.u32 %v3089_v8, %v2806_v4 }
  0x28   : > { %269 = vperm.xlu1 %3169, %v234_v11   ;;  %1272 = vmatpush.bf16.msra.mxu0 %v2611_v58  ;;  %v3642_v11 = vperm.slane %v364_v63, 1 }
  0x29   : > { %3148 = vmatpush.bf16.msra.mxu2 %v2611_v58 }
  0x2a   : > { %1321 = vmatpush.bf16.msra.mxu1 %v2835_v62  ;;  %3156 = vmatpush.bf16.msra.mxu3 %v2835_v62 }
  0x2c   : > { %1273 = vmatpush.bf16.msra.mxu0 %v2583_v7 }
  0x2d   : > { %3149 = vmatpush.bf16.msra.mxu2 %v2583_v7 }
  0x2e   : > { %1322 = vmatpush.bf16.msra.mxu1 %v2807_v10  ;;  %3157 = vmatpush.bf16.msra.mxu3 %v2807_v10  ;;  %v3079_v10 = vld [vmem:[%s4748_s3 + $0x18c] sm:$0xf] }
  0x2f   : > { %319 = vperm.xlu0 %3168, %v244_v13   ;;  %279 = vperm.xlu2 %3170, %v236_v15  }
  0x30   : > { %324 = vperm.xlu1 %3169, %v245_v14  }
  0x37   : > { %284 = vperm.xlu0 %3168, %v237_v16  }
  0x69   : > { %v300_v40 = vpop.permute.xlu2 %299 }
  0x6a   : > { %v352_v1 = vmul.f32 %v3618_v61, %v300_v40  ;;  %v353_v6 = vmul.f32 %v3623_v0, %v300_v40 }
  0x6c   : > { %v390_v12 = vadd.f32 %v3635_v5, %v352_v1  ;;  %v391_v15 = vadd.f32 %v3642_v11, %v353_v6 }
  0x6e   : > { %v422_v22 = vmul.f32 0.5, %v390_v12  ;;  %v423_v28 = vmul.f32 0.5, %v391_v15  ;;  %v2780_v12 = vld [vmem:[%s4748_s3 + $0x1a4] sm:$0xf0] }
  0x70   : > { %3171 = vtanh.f32 %v422_v22 }
  0x71   : > { %v305_v55 = vpop.permute.xlu2 %304 }
  0x72   : > { %v354_v9 = vmul.f32 %v3618_v61, %v305_v55  ;;  %v355_v13 = vmul.f32 %v3623_v0, %v305_v55 }
  0x74   : > { %v392_v18 = vadd.f32 %v3635_v5, %v354_v9  ;;  %v393_v23 = vadd.f32 %v3642_v11, %v355_v13 }
  0x76   : > { %v424_v30 = vmul.f32 0.5, %v392_v18  ;;  %v425_v33 = vmul.f32 0.5, %v393_v23  ;;  %v3172_v49 = vpop.eup %3171  ;;  %v3004_v18 = vld [vmem:[%s4748_s3 + $0x364] sm:$0xf0] }
  0x77   : > { %v3674_v6 = vmul.f32 0.5, %v3172_v49 }
  0x79   : > { %v310_v14 = vpop.permute.xlu2 %309 }
  0x7a   : > { %v356_v19 = vmul.f32 %v3618_v61, %v310_v14  ;;  %v357_v35 = vmul.f32 %v3623_v0, %v310_v14 }
  0x7c   : > { %v394_v31 = vadd.f32 %v3635_v5, %v356_v19  ;;  %v395_v46 = vadd.f32 %v3642_v11, %v357_v35  ;;  %v3083_v35 = vld [vmem:[%s4748_s3 + $0x1a8] sm:$0xf0] }
  0x7e   : > { %v426_v40 = vmul.f32 0.5, %v394_v31  ;;  %v427_v59 = vmul.f32 0.5, %v395_v46 }
  0x81   : > { %v290_v16 = vpop.permute.xlu0 %289  ;;  %v275_v8 = vpop.permute.xlu2 %274 }
  0x82   : > { %v250_v17 = vpop.permute.xlu1 %249  ;;  %v348_v20 = vmul.f32 %v3618_v61, %v290_v16  ;;  %v349_v21 = vmul.f32 %v3623_v0, %v290_v16  ;;  %v342_v14 = vmul.f32 %v3618_v61, %v275_v8  ;;  %v343_v15 = vmul.f32 %v3623_v0, %v275_v8 }
  0x83   : > { %v332_v24 = vmul.f32 %v3618_v61, %v250_v17  ;;  %v333_v25 = vmul.f32 %v3623_v0, %v250_v17  ;;  %v3135_v17 = vld [vmem:[%s4748_s3 + $0x34c] sm:$0xf] }
  0x84   : > { %v386_v26 = vadd.f32 %v3635_v5, %v348_v20  ;;  %v387_v27 = vadd.f32 %v3642_v11, %v349_v21 }
  0x85   : > { %v370_v29 = vadd.f32 %v3635_v5, %v332_v24  ;;  %v371_v34 = vadd.f32 %v3642_v11, %v333_v25 }
  0x86   : > { %v418_v32 = vmul.f32 0.5, %v386_v26  ;;  %v419_v36 = vmul.f32 0.5, %v387_v27 }
  0x87   : > { %v402_v37 = vmul.f32 0.5, %v370_v29  ;;  %v403_v43 = vmul.f32 0.5, %v371_v34  ;;  %v2786_v34 = vld [vmem:[%s4748_s3 + $0x190] sm:$0xf] }
  0x88   : > { %3173 = vtanh.f32 %v418_v32 }
  0x89   : > { %3175 = vtanh.f32 %v423_v28  ;;  %v295_v38 = vpop.permute.xlu0 %294  ;;  %v2783_v28 = vor.u32 %v3079_v10, %v2780_v12  ;;  %v3128_v12 = vld [vmem:[%s4748_s3 + $0x314] sm:$0xf] }
  0x8a   : > { %v255_v39 = vpop.permute.xlu1 %254  ;;  %3177 = vtanh.f32 %v424_v30  ;;  %v350_v41 = vmul.f32 %v3618_v61, %v295_v38  ;;  %v351_v42 = vmul.f32 %v3623_v0, %v295_v38 }
  0x8b   : > { %3179 = vtanh.f32 %v425_v33  ;;  %v334_v44 = vmul.f32 %v3618_v61, %v255_v39  ;;  %v335_v45 = vmul.f32 %v3623_v0, %v255_v39  ;;  %v3007_v33 = vor.u32 %v3135_v17, %v3004_v18  ;;  %1364 = vmatpush.bf16.msrb.mxu2 %v2783_v28 }
  0x8c   : > { %3181 = vtanh.f32 %v419_v36  ;;  %v388_v47 = vadd.f32 %v3635_v5, %v350_v41  ;;  %v389_v48 = vadd.f32 %v3642_v11, %v351_v42 }
  0x8d   : > { %3183 = vtanh.f32 %v402_v37  ;;  %v372_v50 = vadd.f32 %v3635_v5, %v334_v44  ;;  %v373_v51 = vadd.f32 %v3642_v11, %v335_v45  ;;  %1413 = vmatpush.bf16.msrb.mxu3 %v3007_v33  ;;  %v3076_v33 = vld [vmem:[%s4748_s3 + $0x170] sm:$0xf0] }
  0x8e   : > { %v3174_v52 = vpop.eup %3173  ;;  %3185 = vtanh.f32 %v426_v40  ;;  %v420_v53 = vmul.f32 0.5, %v388_v47  ;;  %v421_v54 = vmul.f32 0.5, %v389_v48  ;;  %v2787_v40 = vor.u32 %v3083_v35, %v2786_v34  ;;  %v2724_v34 = vld [vmem:[%s4748_s3 + $0x134] sm:$0xf0] }
  0x8f   : > { %v3176_v55 = vpop.eup %3175  ;;  %3187 = vtanh.f32 %v403_v43  ;;  %v404_v56 = vmul.f32 0.5, %v372_v50  ;;  %v405_v57 = vmul.f32 0.5, %v373_v51  ;;  %v482_v62 = vmul.f32 0.5, %v3174_v52 }
  0x90   : > { %v3669_v58 = vpop.eup %3177  ;;  %3189 = vtanh.f32 %v420_v53  ;;  %v3676_v7 = vmul.f32 0.5, %v3176_v55  ;;  %1462 = vmatpush.bf16.msrb.mxu0 %v2787_v40  ;;  %v3132_v40 = vld [vmem:[%s4748_s3 + $0x330] sm:$0xf0] }
  0x91   : > { %v3671_v60 = vpop.eup %3179  ;;  %3191 = vtanh.f32 %v421_v54  ;;  %v260_v63 = vpop.permute.xlu0 %259  ;;  %v514_v21 = vadd.f32 0.5, %v482_v62  ;;  %v488_v62 = vmul.f32 0.5, %v3669_v58  ;;  %v380_v58 = vadd.f32 %v3635_v5, %v342_v14 }
  0x92   : > { %v3182_v1 = vpop.eup %3181  ;;  %3193 = vtanh.f32 %v404_v56  ;;  %v336_v2 = vmul.f32 %v3618_v61, %v260_v63  ;;  %v265_v3 = vpop.permute.xlu1 %264  ;;  %v337_v9 = vmul.f32 %v3623_v0, %v260_v63  ;;  %v489_v8 = vmul.f32 0.5, %v3671_v60 }
  0x93   : > { %v3184_v4 = vpop.eup %3183  ;;  %3195 = vtanh.f32 %v405_v57  ;;  %v483_v20 = vmul.f32 0.5, %v3182_v1  ;;  %v338_v23 = vmul.f32 %v3618_v61, %v265_v3  ;;  %v339_v27 = vmul.f32 %v3623_v0, %v265_v3  ;;  %v3072_v57 = vld [vmem:[%s4748_s3 + $0x154] sm:$0xf]  ;;  %v3010_v3 = vld [vmem:[%s4748_s3 + $0x350] sm:$0xf] }
  0x94   : > { %v3685_v13 = vpop.eup %3185  ;;  %3197 = vtanh.f32 %v427_v59  ;;  %v374_v16 = vadd.f32 %v3635_v5, %v336_v2  ;;  %v375_v22 = vadd.f32 %v3642_v11, %v337_v9  ;;  %v466_v25 = vmul.f32 0.5, %v3184_v4  ;;  %v2752_v59 = vld [vmem:[%s4748_s3 + $0x16c] sm:$0xf0]  ;;  %v3139_v4 = vld [vmem:[%s4748_s3 + $0x368] sm:$0xf0] }
  0x95   : > { %v3188_v19 = vpop.eup %3187  ;;  %v376_v32 = vadd.f32 %v3635_v5, %v338_v23  ;;  %v377_v39 = vadd.f32 %v3642_v11, %v339_v27  ;;  %v515_v42 = vadd.f32 0.5, %v483_v20  ;;  %v381_v9 = vadd.f32 %v3642_v11, %v343_v15 }
  0x96   : > { %v3190_v24 = vpop.eup %3189  ;;  %v406_v26 = vmul.f32 0.5, %v374_v16  ;;  %v407_v31 = vmul.f32 0.5, %v375_v22  ;;  %v467_v37 = vmul.f32 0.5, %v3188_v19  ;;  %v498_v51 = vadd.f32 0.5, %v466_v25  ;;  %v2976_v16 = vld [vmem:[%s4748_s3 + $0x32c] sm:$0xf0] }
  0x97   : > { %v3192_v29 = vpop.eup %3191  ;;  %v484_v30 = vmul.f32 0.5, %v3190_v24  ;;  %v408_v45 = vmul.f32 0.5, %v376_v32  ;;  %v409_v50 = vmul.f32 0.5, %v377_v39  ;;  %v2755_v60 = vor.u32 %v3072_v57, %v2752_v59  ;;  %v2982_v39 = vld [vmem:[%s4748_s3 + $0x318] sm:$0xf] }
  0x98   : > { %v3194_v36 = vpop.eup %3193  ;;  %v485_v38 = vmul.f32 0.5, %v3192_v29  ;;  %3199 = vtanh.f32 %v406_v26  ;;  %v499_v54 = vadd.f32 0.5, %v467_v37  ;;  %v3743_v15 = vadd.f32 0.5, %v3674_v6  ;;  %v2758_v29 = vld [vmem:[%s4748_s3 + $0x158] sm:$0xf] }
  0x99   : > { %v3196_v41 = vpop.eup %3195  ;;  %v516_v43 = vadd.f32 0.5, %v484_v30  ;;  %v468_v44 = vmul.f32 0.5, %v3194_v36  ;;  %v315_v46 = vpop.permute.xlu0 %314  ;;  %3201 = vtanh.f32 %v407_v31  ;;  %v3746_v18 = vadd.f32 0.5, %v3676_v7  ;;  %1365 = vmatpush.bf16.msrb.mxu2 %v2755_v60  ;;  %v2696_v57 = vld [vmem:[%s4748_s3 + $0xfc] sm:$0xf0] }
  0x9a   : > { %v3198_v47 = vpop.eup %3197  ;;  %v517_v48 = vadd.f32 0.5, %v485_v38  ;;  %v469_v49 = vmul.f32 0.5, %v3196_v41  ;;  %3203 = vtanh.f32 %v408_v45  ;;  %v358_v1 = vmul.f32 %v3618_v61, %v315_v46  ;;  %v270_v2 = vpop.permute.xlu1 %269  ;;  %v2948_v45 = vld [vmem:[%s4748_s3 + $0x2f4] sm:$0xf0] }
  0x9b   : > { %v3707_v52 = vpack.c.bf16 %v516_v43, %v514_v21  ;;  %v500_v53 = vadd.f32 0.5, %v468_v44  ;;  %3205 = vtanh.f32 %v409_v50  ;;  %v359_v17 = vmul.f32 %v3623_v0, %v315_v46  ;;  %v3770_v36 = vpop.permute.xlu2 %279  ;;  %v3121_v44 = vld [vmem:[%s4748_s3 + $0x2dc] sm:$0xf] }
  0x9c   : > { %v3709_v55 = vpack.c.bf16 %v517_v48, %v515_v42  ;;  %v501_v56 = vadd.f32 0.5, %v469_v49  ;;  %v340_v19 = vmul.f32 %v3618_v61, %v270_v2  ;;  %v3011_v20 = vor.u32 %v3139_v4, %v3010_v3  ;;  %v2730_v49 = vld [vmem:[%s4748_s3 + $0x120] sm:$0xf]  ;;  %v3069_v50 = vld [vmem:[%s4748_s3 + $0x138] sm:$0xf0] }
  0x9d   : > { %v3718_v63 = vpack.c.bf16 %v500_v53, %v498_v51  ;;  %1294 = vmatmul.bf16.vlgmr.msra.gmra.mxu2 %v3707_v52  ;;  %v520_v22 = vadd.f32 0.5, %v488_v62  ;;  %v396_v23 = vadd.f32 %v3635_v5, %v358_v1  ;;  %v341_v24 = vmul.f32 %v3623_v0, %v270_v2  ;;  %v2954_v2 = vld [vmem:[%s4748_s3 + $0x2e0] sm:$0xf]  ;;  %v3125_v3 = vld [vmem:[%s4748_s3 + $0x2f8] sm:$0xf0] }
  0x9e   : > { %v3731_v10 = vpack.c.bf16 %v501_v56, %v499_v54  ;;  %1343 = vmatmul.bf16.vlgmr.msra.gmra.mxu3 %v3709_v55  ;;  %v3200_v14 = vpop.eup %3199  ;;  %v2979_v25 = vor.u32 %v3128_v12, %v2976_v16  ;;  %v521_v27 = vadd.f32 0.5, %v489_v8  ;;  %v3753_v6 = vmul.f32 0.5, %v3685_v13  ;;  %1511 = vmatpush.bf16.msrb.mxu1 %v3011_v20  ;;  %v3065_v13 = vld [vmem:[%s4748_s3 + $0x11c] sm:$0xf]  ;;  %v3058_v56 = vld [vmem:[%s4748_s3 + $0xe4] sm:$0xf] }
  0x9f   : > { %1274 = vmatmul.bf16.vlgmr.msra.gmra.mxu0 %v3718_v63  ;;  %v3202_v21 = vpop.eup %3201  ;;  %v412_v7 = vmul.f32 0.5, %v380_v58  ;;  %v413_v28 = vmul.f32 0.5, %v381_v9  ;;  %v397_v31 = vadd.f32 %v3642_v11, %v359_v17  ;;  %v3768_v35 = vmul.f32 0.5, %v3198_v47  ;;  %v3114_v12 = vld [vmem:[%s4748_s3 + $0x2a4] sm:$0xf] }
  0xa0   : > { %1323 = vmatmul.bf16.vlgmr.msra.gmra.mxu1 %v3731_v10  ;;  %v3204_v26 = vpop.eup %3203  ;;  %1414 = vmatpush.bf16.msrb.mxu3 %v2979_v25  ;;  %v470_v37 = vmul.f32 0.5, %v3200_v14  ;;  %v378_v38 = vadd.f32 %v3635_v5, %v340_v19  ;;  %v428_v42 = vmul.f32 0.5, %v396_v23  ;;  %v379_v43 = vadd.f32 %v3642_v11, %v341_v24  ;;  %v2920_v19 = vld [vmem:[%s4748_s3 + $0x2bc] sm:$0xf0]  ;;  %v2702_v20 = vld [vmem:[%s4748_s3 + $0xe8] sm:$0xf] }
  0xa1   : > { %v3206_v30 = vpop.eup %3205  ;;  %v320_v32 = vpop.permute.xlu0 %319  ;;  %v472_v41 = vmul.f32 0.5, %v3204_v26  ;;  %v471_v46 = vmul.f32 0.5, %v3202_v21  ;;  %v2759_v48 = vor.u32 %v3076_v33, %v2758_v29  ;;  %3207 = vtanh.f32 %v412_v7  ;;  %v3062_v25 = vld [vmem:[%s4748_s3 + $0x100] sm:$0xf0]  ;;  %v3051_v26 = vld [vmem:[%s4748_s3 + $0xac] sm:$0xf] }
  0xa2   : > { %v473_v47 = vmul.f32 0.5, %v3206_v30  ;;  %v344_v51 = vmul.f32 %v3618_v61, %v3770_v36  ;;  %v429_v53 = vmul.f32 0.5, %v397_v31  ;;  %v2727_v54 = vor.u32 %v3065_v13, %v2724_v34  ;;  %v325_v60 = vpop.permute.xlu1 %324  ;;  %v2668_v7 = vld [vmem:[%s4748_s3 + $0xc4] sm:$0xf0] }
  0xa3   : > { %3209 = vtanh.f32 %v413_v28  ;;  %v502_v59 = vadd.f32 0.5, %v470_v37  ;;  %v410_v62 = vmul.f32 0.5, %v378_v38  ;;  %1463 = vmatpush.bf16.msrb.mxu0 %v2759_v48  ;;  %v2983_v1 = vor.u32 %v3132_v40, %v2982_v39  ;;  %v3118_v28 = vld [vmem:[%s4748_s3 + $0x2c0] sm:$0xf0]  ;;  %v2892_v34 = vld [vmem:[%s4748_s3 + $0x284] sm:$0xf0] }
  0xa4   : > { %v504_v4 = vadd.f32 0.5, %v472_v41  ;;  %v411_v8 = vmul.f32 0.5, %v379_v43  ;;  %1366 = vmatpush.bf16.msrb.mxu2 %v2727_v54  ;;  %v2951_v58 = vor.u32 %v3121_v44, %v2948_v45  ;;  %v2731_v9 = vor.u32 %v3069_v50, %v2730_v49  ;;  %v2674_v41 = vld [vmem:[%s4748_s3 + $0xb0] sm:$0xf]  ;;  %v3111_v54 = vld [vmem:[%s4748_s3 + $0x288] sm:$0xf0] }
  0xa5   : > { %v503_v16 = vadd.f32 0.5, %v471_v46  ;;  %v505_v17 = vadd.f32 0.5, %v473_v47  ;;  %3211 = vtanh.f32 %v428_v42  ;;  %1512 = vmatpush.bf16.msrb.mxu1 %v2983_v1  ;;  %v2699_v14 = vor.u32 %v3058_v56, %v2696_v57  ;;  %v3055_v42 = vld [vmem:[%s4748_s3 + $0xc8] sm:$0xf0]  ;;  %v3044_v46 = vld [vmem:[%s4748_s3 + $0x74] sm:$0xf] }
  0xa6   : > { %v3816_v21 = vpack.c.bf16 %v520_v22, %v3743_v15  ;;  %v3819_v23 = vpack.c.bf16 %v521_v27, %v3746_v18  ;;  %3213 = vtanh.f32 %v429_v53  ;;  %1415 = vmatpush.bf16.msrb.mxu3 %v2951_v58  ;;  %v2955_v24 = vor.u32 %v3125_v3, %v2954_v2  ;;  %v2926_v27 = vld [vmem:[%s4748_s3 + $0x2a8] sm:$0xf]  ;;  %v2640_v47 = vld [vmem:[%s4748_s3 + $0x8c] sm:$0xf0]  ;;  %v3048_v58 = vld [vmem:[%s4748_s3 + $0x90] sm:$0xf0] }
  0xa7   : > { %v382_v15 = vadd.f32 %v3635_v5, %v344_v51  ;;  %3215 = vtanh.f32 %v410_v62  ;;  %v360_v18 = vmul.f32 %v3618_v61, %v320_v32  ;;  %v361_v22 = vmul.f32 %v3623_v0, %v320_v32  ;;  %1464 = vmatpush.bf16.msrb.mxu0 %v2731_v9  ;;  %v3208_v29 = vpop.eup %3207  ;;  %v3107_v32 = vld [vmem:[%s4748_s3 + $0x26c] sm:$0xf]  ;;  %v2898_v53 = vld [vmem:[%s4748_s3 + $0x270] sm:$0xf]  ;;  %v3100_v62 = vld [vmem:[%s4748_s3 + $0x234] sm:$0xf] }
  0xa8   : > { %v3839_v30 = vpack.c.bf16 %v504_v4, %v502_v59  ;;  %3217 = vtanh.f32 %v411_v8  ;;  %v362_v31 = vmul.f32 %v3618_v61, %v325_v60  ;;  %v2923_v13 = vor.u32 %v3114_v12, %v2920_v19  ;;  %1367 = vmatpush.bf16.msrb.mxu2 %v2699_v14  ;;  %v2864_v1 = vld [vmem:[%s4748_s3 + $0x24c] sm:$0xf0]  ;;  %v3037_v14 = vld [vmem:[%s4748_s3 + $0x3c] sm:$0xf]  ;;  %v2612_v19 = vld [vmem:[%s4748_s3 + $0x54] sm:$0xf0] }
  0xa9   : > { %v285_v33 = vpop.permute.xlu0 %284  ;;  %v3210_v37 = vpop.eup %3209  ;;  %v3849_v38 = vpack.c.bf16 %v505_v17, %v503_v16  ;;  %v2703_v39 = vor.u32 %v3062_v25, %v2702_v20  ;;  %v2671_v40 = vor.u32 %v3051_v26, %v2668_v7  ;;  %v3859_v43 = vadd.f32 0.5, %v3753_v6  ;;  %1513 = vmatpush.bf16.msrb.mxu1 %v2955_v24  ;;  %v2870_v7 = vld [vmem:[%s4748_s3 + $0x238] sm:$0xf] }
  0xaa   : > { %v363_v44 = vmul.f32 %v3623_v0, %v325_v60  ;;  %v2927_v45 = vor.u32 %v3118_v28, %v2926_v27  ;;  %v3870_v49 = vadd.f32 0.5, %v3768_v35  ;;  %v398_v6 = vadd.f32 %v3635_v5, %v360_v18  ;;  %1416 = vmatpush.bf16.msrb.mxu3 %v2923_v13 }
  0xab   : > { %v3212_v48 = vpop.eup %3211  ;;  %v346_v50 = vmul.f32 %v3618_v61, %v285_v33  ;;  %v2895_v51 = vor.u32 %v3107_v32, %v2892_v34  ;;  %v345_v35 = vmul.f32 %v3623_v0, %v3770_v36  ;;  %v399_v57 = vadd.f32 %v3642_v11, %v361_v22  ;;  %1465 = vmatpush.bf16.msrb.mxu0 %v2703_v39  ;;  %v2618_v34 = vld [vmem:[%s4748_s3 + $0x40] sm:$0xf] }
  0xac   : > { %v3214_v56 = vpop.eup %3213  ;;  %v347_v61 = vmul.f32 %v3623_v0, %v285_v33  ;;  %v2675_v59 = vor.u32 %v3055_v42, %v2674_v41  ;;  %v476_v3 = vmul.f32 0.5, %v3208_v29  ;;  %v3891_v4 = vmul.f32 0.5, %v382_v15  ;;  %1368 = vmatpush.bf16.msrb.mxu2 %v2671_v40  ;;  %v2646_v0 = vld [vmem:[%s4748_s3 + $0x78] sm:$0xf]  ;;  %v3104_v15 = vld [vmem:[%s4748_s3 + $0x250] sm:$0xf0] }
  0xad   : > { %1299 = vmatmul.bf16.gmra.mxu2 %v3816_v21  ;;  %v3216_v2 = vpop.eup %3215  ;;  %v400_v36 = vadd.f32 %v3635_v5, %v362_v31  ;;  %v2643_v8 = vor.u32 %v3044_v46, %v2640_v47  ;;  %v477_v12 = vmul.f32 0.5, %v3210_v37  ;;  %v492_v16 = vmul.f32 0.5, %v3212_v48  ;;  %1514 = vmatpush.bf16.msrb.mxu1 %v2927_v45  ;;  %v2836_v29 = vld [vmem:[%s4748_s3 + $0x214] sm:$0xf0]  ;;  %v3041_v37 = vld [vmem:[%s4748_s3 + $0x58] sm:$0xf0] }
  0xae   : > { %1348 = vmatmul.bf16.gmra.mxu3 %v3819_v23  ;;  %v3218_v9 = vpop.eup %3217  ;;  %v401_v17 = vadd.f32 %v3642_v11, %v363_v44  ;;  %v2899_v60 = vor.u32 %v3111_v54, %v2898_v53  ;;  %v493_v20 = vmul.f32 0.5, %v3214_v56  ;;  %v430_v24 = vmul.f32 0.5, %v398_v6  ;;  %v2584_v42 = vld [vmem:[%s4748_s3 + $0x1c] sm:$0xf0]  ;;  %v3097_v48 = vld [vmem:[%s4748_s3 + $0x218] sm:$0xf0] }
  0xaf   : > { %1279 = vmatmul.bf16.gmra.mxu0 %v3839_v30  ;;  %v384_v25 = vadd.f32 %v3635_v5, %v346_v50  ;;  %1417 = vmatpush.bf16.msrb.mxu3 %v2895_v51  ;;  %v2867_v26 = vor.u32 %v3100_v62, %v2864_v1  ;;  %v474_v18 = vmul.f32 0.5, %v3216_v2  ;;  %v431_v22 = vmul.f32 0.5, %v399_v57  ;;  %v3093_v5 = vld [vmem:[%s4748_s3 + $0x1fc] sm:$0xf]  ;;  %v2842_v47 = vld [vmem:[%s4748_s3 + $0x200] sm:$0xf] }
  0xb0   : > { %1328 = vmatmul.bf16.gmra.mxu1 %v3849_v38  ;;  %v385_v27 = vadd.f32 %v3642_v11, %v347_v61  ;;  %1466 = vmatpush.bf16.msrb.mxu0 %v2675_v59  ;;  %v2647_v28 = vor.u32 %v3048_v58, %v2646_v0  ;;  %v383_v31 = vadd.f32 %v3642_v11, %v345_v35  ;;  %v475_v33 = vmul.f32 0.5, %v3218_v9  ;;  %v3030_v11 = vld [vmem:[%s4748_s3 + $0x4] sm:$0xf]  ;;  %v2808_v54 = vld [vmem:[%s4748_s3 + $0x1dc] sm:$0xf0] }
  0xb1   : > { %v432_v13 = vmul.f32 0.5, %v400_v36  ;;  %1369 = vmatpush.bf16.msrb.mxu2 %v2643_v8  ;;  %v2615_v32 = vor.u32 %v3037_v14, %v2612_v19  ;;  %v524_v39 = vadd.f32 0.5, %v492_v16  ;;  %v433_v40 = vmul.f32 0.5, %v401_v17  ;;  %1515 = vmatpush.bf16.msrb.mxu1 %v2899_v60  ;;  %v3086_v53 = vld [vmem:[%s4748_s3 + $0x1c4] sm:$0xf] }
  0xb2   : > { %v2871_v41 = vor.u32 %v3104_v15, %v2870_v7  ;;  %v525_v44 = vadd.f32 0.5, %v493_v20  ;;  %3219 = vtanh.f32 %v430_v24  ;;  %v416_v45 = vmul.f32 0.5, %v384_v25  ;;  %v2590_v61 = vld [vmem:[%s4748_s3 + $0x8] sm:$0xf]  ;;  %v3034_v59 = vld [vmem:[%s4748_s3 + $0x20] sm:$0xf0] }
  0xb3   : > { %1418 = vmatpush.bf16.msrb.mxu3 %v2867_v26  ;;  %v2839_v46 = vor.u32 %v3093_v5, %v2836_v29  ;;  %v506_v6 = vadd.f32 0.5, %v474_v18  ;;  %3221 = vtanh.f32 %v431_v22  ;;  %v417_v50 = vmul.f32 0.5, %v385_v27  ;;  %v2814_v58 = vld [vmem:[%s4748_s3 + $0x1c8] sm:$0xf]  ;;  %v3080_v14 = vld [vmem:[%s4748_s3 + $0x194] sm:$0xf] }
  0xb4   : > { %1467 = vmatpush.bf16.msrb.mxu0 %v2647_v28  ;;  %v2619_v51 = vor.u32 %v3041_v37, %v2618_v34  ;;  %v415_v56 = vmul.f32 0.5, %v383_v31  ;;  %v507_v35 = vadd.f32 0.5, %v475_v33  ;;  %3223 = vtanh.f32 %v432_v13  ;;  %v3136_v19 = vld [vmem:[%s4748_s3 + $0x354] sm:$0xf]  ;;  %v3012_v25 = vld [vmem:[%s4748_s3 + $0x36c] sm:$0xf0] }
  0xb5   : > { %1370 = vmatpush.bf16.msrb.mxu2 %v2615_v32  ;;  %v2587_v57 = vor.u32 %v3030_v11, %v2584_v42  ;;  %v508_v62 = vadd.f32 0.5, %v476_v3  ;;  %v3953_v1 = vpack.c.bf16 %v524_v39, %v3859_v43  ;;  %3225 = vtanh.f32 %v433_v40  ;;  %1516 = vmatpush.bf16.msrb.mxu1 %v2871_v41  ;;  %v3090_v3 = vld [vmem:[%s4748_s3 + $0x1e0] sm:$0xf0]  ;;  %v2794_v26 = vld [vmem:[%s4748_s3 + $0x198] sm:$0xf] }
  0xb6   : > { %v2843_v2 = vor.u32 %v3097_v48, %v2842_v47  ;;  %v509_v36 = vadd.f32 0.5, %v477_v12  ;;  %v3956_v8 = vpack.c.bf16 %v525_v44, %v3870_v49  ;;  %3227 = vtanh.f32 %v416_v45  ;;  %v3084_v7 = vld [vmem:[%s4748_s3 + $0x1b0] sm:$0xf0]  ;;  %v3018_v27 = vld [vmem:[%s4748_s3 + $0x358] sm:$0xf] }
  0xb7   : > { %1419 = vmatpush.bf16.msrb.mxu3 %v2839_v46  ;;  %v2811_v0 = vor.u32 %v3086_v53, %v2808_v54  ;;  %v3964_v43 = vpack.c.bf16 %v508_v62, %v506_v6  ;;  %3229 = vtanh.f32 %v417_v50  ;;  %v2591_v9 = vor.u32 %v3034_v59, %v2590_v61  ;;  %v3140_v28 = vld [vmem:[%s4748_s3 + $0x370] sm:$0xf0]  ;;  %v3129_v61 = vld [vmem:[%s4748_s3 + $0x31c] sm:$0xf]  ;;  %v2984_v62 = vld [vmem:[%s4748_s3 + $0x334] sm:$0xf0] }
  0xb8   : > { %1468 = vmatpush.bf16.msrb.mxu0 %v2619_v51  ;;  %v3220_v49 = vpop.eup %3219  ;;  %3231 = vtanh.f32 %v3891_v4  ;;  %v3968_v12 = vpack.c.bf16 %v509_v36, %v507_v35  ;;  %v2815_v17 = vor.u32 %v3090_v3, %v2814_v58  ;;  %v2788_v4 = vld [vmem:[%s4748_s3 + $0x1ac] sm:$0xf0]  ;;  %v3015_v18 = vor.u32 %v3136_v19, %v3012_v25  ;;  %v3073_v35 = vld [vmem:[%s4748_s3 + $0x15c] sm:$0xf]  ;;  %v2990_v3 = vld [vmem:[%s4748_s3 + $0x320] sm:$0xf] }
  0xb9   : > { %1371 = vmatpush.bf16.msrb.mxu2 %v2587_v57  ;;  %v3222_v16 = vpop.eup %3221  ;;  %3233 = vtanh.f32 %v415_v56  ;;  %1517 = vmatpush.bf16.msrb.mxu1 %v2843_v2  ;;  %v2791_v24 = vor.u32 %v3080_v14, %v2788_v4  ;;  %v2795_v22 = vor.u32 %v3084_v7, %v2794_v26  ;;  %v494_v29 = vmul.f32 0.5, %v3220_v49  ;;  %v2760_v57 = vld [vmem:[%s4748_s3 + $0x174] sm:$0xf0]  ;;  %v2766_v2 = vld [vmem:[%s4748_s3 + $0x160] sm:$0xf] }
  0xba   : > { %v3224_v60 = vpop.eup %3223  ;;  %v3019_v33 = vor.u32 %v3140_v28, %v3018_v27  ;;  %v495_v32 = vmul.f32 0.5, %v3222_v16  ;;  %v2763_v59 = vor.u32 %v3073_v35, %v2760_v57  ;;  %v3077_v36 = vld [vmem:[%s4748_s3 + $0x178] sm:$0xf0]  ;;  %v3066_v16 = vld [vmem:[%s4748_s3 + $0x124] sm:$0xf] }
  0xbb   : > { %1420 = vmatpush.bf16.msrb.mxu3 %v2811_v0  ;;  %v3226_v20 = vpop.eup %3225  ;;  %v496_v31 = vmul.f32 0.5, %v3224_v60  ;;  %v526_v11 = vadd.f32 0.5, %v494_v29  ;;  %v2987_v0 = vor.u32 %v3129_v61, %v2984_v62  ;;  %v2767_v58 = vor.u32 %v3077_v36, %v2766_v2  ;;  %v3122_v60 = vld [vmem:[%s4748_s3 + $0x2e4] sm:$0xf]  ;;  %v2956_v4 = vld [vmem:[%s4748_s3 + $0x2fc] sm:$0xf0] }
  0xbc   : > { %1469 = vmatpush.bf16.msrb.mxu0 %v2591_v9  ;;  %v3228_v15 = vpop.eup %3227  ;;  %v497_v34 = vmul.f32 0.5, %v3226_v20  ;;  %v527_v45 = vadd.f32 0.5, %v495_v32  ;;  %v3133_v9 = vld [vmem:[%s4748_s3 + $0x338] sm:$0xf0]  ;;  %v2738_v19 = vld [vmem:[%s4748_s3 + $0x128] sm:$0xf] }
  0xbd   : > { %1304 = vmatmul.bf16.gmra.mxu2 %v3953_v1  ;;  %v3230_v5 = vpop.eup %3229  ;;  %1518 = vmatpush.bf16.msrb.mxu1 %v2815_v17  ;;  %v480_v39 = vmul.f32 0.5, %v3228_v15  ;;  %v528_v42 = vadd.f32 0.5, %v496_v31  ;;  %v2991_v49 = vor.u32 %v3133_v9, %v2990_v3  ;;  %v2732_v17 = vld [vmem:[%s4748_s3 + $0x13c] sm:$0xf0]  ;;  %v3070_v20 = vld [vmem:[%s4748_s3 + $0x140] sm:$0xf0] }
  0xbe   : > { %1353 = vmatmul.bf16.gmra.mxu3 %v3956_v8  ;;  %1560 = vmatpush.bf16.msra.mxu2 %v2791_v24  ;;  %v3232_v13 = vpop.eup %3231  ;;  %v481_v40 = vmul.f32 0.5, %v3230_v5  ;;  %v529_v46 = vadd.f32 0.5, %v497_v34  ;;  %v2735_v14 = vor.u32 %v3066_v16, %v2732_v17  ;;  %v2959_v24 = vor.u32 %v3122_v60, %v2956_v4  ;;  %v2962_v26 = vld [vmem:[%s4748_s3 + $0x2e8] sm:$0xf]  ;;  %v3126_v7 = vld [vmem:[%s4748_s3 + $0x300] sm:$0xf0] }
  0xbf   : > { %1284 = vmatmul.bf16.gmra.mxu0 %v3964_v43  ;;  %1609 = vmatpush.bf16.msra.mxu3 %v3015_v18  ;;  %v3234_v37 = vpop.eup %3233  ;;  %v478_v41 = vmul.f32 0.5, %v3232_v13  ;;  %v512_v47 = vadd.f32 0.5, %v480_v39  ;;  %v3997_v50 = vpack.c.bf16 %v528_v42, %v526_v11  ;;  %v2739_v25 = vor.u32 %v3070_v20, %v2738_v19  ;;  %v3059_v18 = vld [vmem:[%s4748_s3 + $0xec] sm:$0xf]  ;;  %v2928_v5 = vld [vmem:[%s4748_s3 + $0x2c4] sm:$0xf0] }
  0xc0   : > { %1333 = vmatmul.bf16.gmra.mxu1 %v3968_v12  ;;  %1658 = vmatpush.bf16.msra.mxu0 %v2795_v22  ;;  %v479_v44 = vmul.f32 0.5, %v3234_v37  ;;  %v513_v48 = vadd.f32 0.5, %v481_v40  ;;  %v3999_v53 = vpack.c.bf16 %v529_v46, %v527_v45  ;;  %v2963_v15 = vor.u32 %v3126_v7, %v2962_v26  ;;  %v2704_v22 = vld [vmem:[%s4748_s3 + $0x104] sm:$0xf0]  ;;  %v3115_v27 = vld [vmem:[%s4748_s3 + $0x2ac] sm:$0xf] }
  0xc1   : > { %1707 = vmatpush.bf16.msra.mxu1 %v3019_v33  ;;  %v510_v6 = vadd.f32 0.5, %v478_v41  ;;  %v2707_v28 = vor.u32 %v3059_v18, %v2704_v22  ;;  %v2710_v29 = vld [vmem:[%s4748_s3 + $0xf0] sm:$0xf]  ;;  %v3063_v31 = vld [vmem:[%s4748_s3 + $0x108] sm:$0xf0]  ;;  %v2931_v33 = vor.u32 %v3115_v27, %v2928_v5 }
  0xc2   : > { %v511_v51 = vadd.f32 0.5, %v479_v44  ;;  %1561 = vmatpush.bf16.msra.mxu2 %v2763_v59  ;;  %v2711_v13 = vor.u32 %v3063_v31, %v2710_v29  ;;  %v2934_v32 = vld [vmem:[%s4748_s3 + $0x2b0] sm:$0xf]  ;;  %v3119_v34 = vld [vmem:[%s4748_s3 + $0x2c8] sm:$0xf0] }
  0xc3   : > { %v4001_v54 = vpack.c.bf16 %v512_v47, %v510_v6  ;;  %1610 = vmatpush.bf16.msra.mxu3 %v2987_v0  ;;  %v2935_v37 = vor.u32 %v3119_v34, %v2934_v32  ;;  %v3052_v39 = vld [vmem:[%s4748_s3 + $0xb4] sm:$0xf]  ;;  %v2676_v40 = vld [vmem:[%s4748_s3 + $0xcc] sm:$0xf0]  ;;  %v4112_v45 = vld [vmem:[%s4749_s4] sm:$0x7f] }
  0xc4   : > { %v4004_v56 = vpack.c.bf16 %v513_v48, %v511_v51  ;;  %1659 = vmatpush.bf16.msra.mxu0 %v2767_v58  ;;  %v3108_v41 = vld [vmem:[%s4748_s3 + $0x274] sm:$0xf]  ;;  %v2679_v11 = vor.u32 %v3052_v39, %v2676_v40  ;;  %v2900_v42 = vld [vmem:[%s4748_s3 + $0x28c] sm:$0xf0]  ;;  %v2682_v46 = vld [vmem:[%s4748_s3 + $0xb8] sm:$0xf] }
  0xc5   : > { %1708 = vmatpush.bf16.msra.mxu1 %v2991_v49  ;;  %v2903_v44 = vor.u32 %v3108_v41, %v2900_v42  ;;  %v3056_v47 = vld [vmem:[%s4748_s3 + $0xd0] sm:$0xf0]  ;;  %v2906_v48 = vld [vmem:[%s4748_s3 + $0x278] sm:$0xf]  ;;  %v4127_v57 = vperm.slane %v4112_v45, 0 }
  0xc6   : > { %1562 = vmatpush.bf16.msra.mxu2 %v2735_v14  ;;  %v2683_v6 = vor.u32 %v3056_v47, %v2682_v46  ;;  %v3112_v51 = vld [vmem:[%s4748_s3 + $0x290] sm:$0xf0]  ;;  %v3045_v2 = vld [vmem:[%s4748_s3 + $0x7c] sm:$0xf]  ;;  %v2648_v36 = vld [vmem:[%s4748_s3 + $0x94] sm:$0xf0] }
  0xc7   : > { %1611 = vmatpush.bf16.msra.mxu3 %v2959_v24  ;;  %v2907_v35 = vor.u32 %v3112_v51, %v2906_v48  ;;  %v3101_v0 = vld [vmem:[%s4748_s3 + $0x23c] sm:$0xf]  ;;  %v2651_v3 = vor.u32 %v3045_v2, %v2648_v36  ;;  %v2872_v9 = vld [vmem:[%s4748_s3 + $0x254] sm:$0xf0]  ;;  %v2654_v26 = vld [vmem:[%s4748_s3 + $0x80] sm:$0xf] }
  0xc8   : > { %1660 = vmatpush.bf16.msra.mxu0 %v2739_v25  ;;  %v2875_v16 = vor.u32 %v3101_v0, %v2872_v9  ;;  %v3049_v7 = vld [vmem:[%s4748_s3 + $0x98] sm:$0xf0]  ;;  %v3038_v46 = vld [vmem:[%s4748_s3 + $0x44] sm:$0xf]  ;;  %v2620_v47 = vld [vmem:[%s4748_s3 + $0x5c] sm:$0xf0] }
  0xc9   : > { %1709 = vmatpush.bf16.msra.mxu1 %v2963_v15  ;;  %v2878_v15 = vld [vmem:[%s4748_s3 + $0x240] sm:$0xf]  ;;  %v2655_v22 = vor.u32 %v3049_v7, %v2654_v26  ;;  %v3105_v27 = vld [vmem:[%s4748_s3 + $0x258] sm:$0xf0]  ;;  %v3094_v51 = vld [vmem:[%s4748_s3 + $0x204] sm:$0xf] }
  0xca   : > { %1563 = vmatpush.bf16.msra.mxu2 %v2707_v28  ;;  %v2879_v5 = vor.u32 %v3105_v27, %v2878_v15  ;;  %v2850_v7 = vld [vmem:[%s4748_s3 + $0x208] sm:$0xf]  ;;  %v3098_v15 = vld [vmem:[%s4748_s3 + $0x220] sm:$0xf0] }
  0xcb   : > { %1612 = vmatpush.bf16.msra.mxu3 %v2931_v33  ;;  %v2851_v27 = vor.u32 %v3098_v15, %v2850_v7 }
  0xcc   : > { %1661 = vmatpush.bf16.msra.mxu0 %v2711_v13 }
  0xcd   : > { %1309 = vmatmul.bf16.gmra.mxu2 %v3997_v50  ;;  %1710 = vmatpush.bf16.msra.mxu1 %v2935_v37 }
  0xce   : > { %1358 = vmatmul.bf16.gmra.mxu3 %v3999_v53  ;;  %1564 = vmatpush.bf16.msra.mxu2 %v2679_v11 }
  0xcf   : > { %1289 = vmatmul.bf16.gmra.mxu0 %v4001_v54  ;;  %1613 = vmatpush.bf16.msra.mxu3 %v2903_v44 }
  0xd0   : > { %1338 = vmatmul.bf16.gmra.mxu1 %v4004_v56  ;;  %1662 = vmatpush.bf16.msra.mxu0 %v2683_v6  ;;  %v2623_v6 = vor.u32 %v3038_v46, %v2620_v47  ;;  %v3087_v46 = vld [vmem:[%s4748_s3 + $0x1cc] sm:$0xf]  ;;  %v2816_v47 = vld [vmem:[%s4748_s3 + $0x1e4] sm:$0xf0] }
  0xd1   : > { %1711 = vmatpush.bf16.msra.mxu1 %v2907_v35  ;;  %v2844_v35 = vld [vmem:[%s4748_s3 + $0x21c] sm:$0xf0] }
  0xd2   : > { %1565 = vmatpush.bf16.msra.mxu2 %v2651_v3 }
  0xd3   : > { %1614 = vmatpush.bf16.msra.mxu3 %v2875_v16 }
  0xd4   : > { %1663 = vmatpush.bf16.msra.mxu0 %v2655_v22 }
  0xd5   : > { %1712 = vmatpush.bf16.msra.mxu1 %v2879_v5 }
  0xd6   : > { %1566 = vmatpush.bf16.msra.mxu2 %v2623_v6  ;;  %v2819_v6 = vor.u32 %v3087_v46, %v2816_v47  ;;  %v3137_v46 = vld [vmem:[%s4748_s3 + $0x35c] sm:$0xf]  ;;  %v3020_v47 = vld [vmem:[%s4748_s3 + $0x374] sm:$0xf0] }
  0xd9   : > { %1713 = vmatpush.bf16.msra.mxu1 %v2851_v27 }
  0xdd   : > { %1372 = vmatmul.bf16.vlgmr.msrb.gmra.mxu2 %v3718_v63 }
  0xde   : > { %1421 = vmatmul.bf16.vlgmr.msrb.gmra.mxu3 %v3731_v10 }
  0xdf   : > { %1470 = vmatmul.bf16.vlgmr.msrb.gmra.mxu0 %v3718_v63 }
  0xe0   : > { %1519 = vmatmul.bf16.vlgmr.msrb.gmra.mxu1 %v3731_v10 }
  0xed   : > { %1377 = vmatmul.bf16.gmra.mxu2 %v3839_v30 }
  0xee   : > { %1426 = vmatmul.bf16.gmra.mxu3 %v3849_v38 }
  0xef   : > { %1475 = vmatmul.bf16.gmra.mxu0 %v3839_v30 }
  0xf0   : > { %1524 = vmatmul.bf16.gmra.mxu1 %v3849_v38 }
  0xfd   : > { %1382 = vmatmul.bf16.gmra.mxu2 %v3964_v43 }
  0xfe   : > { %1431 = vmatmul.bf16.gmra.mxu3 %v3968_v12 }
  0xff   : > { %1480 = vmatmul.bf16.gmra.mxu0 %v3964_v43 }
 0x100   : > { %1529 = vmatmul.bf16.gmra.mxu1 %v3968_v12 }
 0x10d   : > { %1387 = vmatmul.bf16.gmra.mxu2 %v4001_v54 }
 0x10e   : > { %1436 = vmatmul.bf16.gmra.mxu3 %v4004_v56 }
 0x10f   : > { %1485 = vmatmul.bf16.gmra.mxu0 %v4001_v54 }
 0x110   : > { %1534 = vmatmul.bf16.gmra.mxu1 %v4004_v56 }
 0x11c   : > { %v1275_v61 = vpop.f32.mrf.mxu0 }
 0x11d   : > { %v1276_v59 = vadd.f32 %v1275_v61, %v4127_v57  ;;  %v1324_v62 = vpop.f32.mrf.mxu1  ;;  %1392 = vmatmul.bf16.gmra.mxu2 %v3707_v52 }
 0x11e   : > { %1441 = vmatmul.bf16.gmra.mxu3 %v3709_v55 }
 0x11f   : > { %v1325_v58 = vadd.f32 %v1324_v62, %v1276_v59  ;;  %1490 = vmatmul.bf16.gmra.mxu0 %v3707_v52  ;;  %v2847_v62 = vor.u32 %v3094_v51, %v2844_v35  ;;  %v2598_v51 = vld [vmem:[%s4748_s3 + $0x10] sm:$0xf]  ;;  %v3035_v35 = vld [vmem:[%s4748_s3 + $0x28] sm:$0xf0] }
 0x120   : > { %1539 = vmatmul.bf16.gmra.mxu1 %v3709_v55  ;;  %v1295_v49 = vpop.f32.mrf.mxu2 }
 0x121   : > { %v1952_v17 = vmul.f32 0.5, %v1325_v58  ;;  %v1296_v60 = vadd.f32 %v1295_v49, %v4127_v57  ;;  %v1344_v14 = vpop.f32.mrf.mxu3  ;;  %1615 = vmatpush.bf16.msra.mxu3 %v2847_v62  ;;  %v2822_v62 = vld [vmem:[%s4748_s3 + $0x1d0] sm:$0xf] }
 0x123   : > { %3235 = vtanh.f32 %v1952_v17  ;;  %v1345_v4 = vadd.f32 %v1344_v14, %v1296_v60 }
 0x124   : > { %v1277_v19 = vpop.f32.mrf.mxu0 }
 0x125   : > { %v2008_v20 = vmul.f32 0.5, %v1345_v4  ;;  %v1278_v24 = vadd.f32 %v1277_v19, %v4127_v57  ;;  %v1326_v25 = vpop.f32.mrf.mxu1  ;;  %1616 = vmatpush.bf16.msra.mxu3 %v2819_v6 }
 0x127   : > { %3237 = vtanh.f32 %v2008_v20  ;;  %v1327_v18 = vadd.f32 %v1326_v25, %v1278_v24  ;;  %v2626_v20 = vld [vmem:[%s4748_s3 + $0x48] sm:$0xf]  ;;  %v3042_v24 = vld [vmem:[%s4748_s3 + $0x60] sm:$0xf0] }
 0x128   : > { %v1297_v28 = vpop.f32.mrf.mxu2  ;;  %v2627_v26 = vor.u32 %v3042_v24, %v2626_v20 }
 0x129   : > { %v3236_v29 = vpop.eup %3235  ;;  %v1959_v31 = vmul.f32 0.5, %v1327_v18  ;;  %v1298_v33 = vadd.f32 %v1297_v28, %v4127_v57  ;;  %v1346_v13 = vpop.f32.mrf.mxu3 }
 0x12a   : > { %v2176_v32 = vmul.f32 0.5, %v3236_v29  ;;  %1664 = vmatpush.bf16.msra.mxu0 %v2627_v26 }
 0x12b   : > { %3239 = vtanh.f32 %v1959_v31  ;;  %v1347_v34 = vadd.f32 %v1346_v13, %v1298_v33 }
 0x12c   : > { %v2288_v37 = vadd.f32 0.5, %v2176_v32  ;;  %v1280_v39 = vpop.f32.mrf.mxu0 }
 0x12d   : > { %v3238_v40 = vpop.eup %3237  ;;  %v2015_v41 = vmul.f32 0.5, %v1347_v34  ;;  %v1281_v11 = vadd.f32 %v1280_v39, %v4127_v57  ;;  %v1329_v42 = vpop.f32.mrf.mxu1  ;;  %1397 = vmatmul.bf16.gmra.mxu2 %v3816_v21  ;;  %v2592_v39 = vld [vmem:[%s4748_s3 + $0x24] sm:$0xf0] }
 0x12e   : > { %2400 = vst [vmem:[%s4165_s20] sm:$0xff] %v2288_v37  ;;  %v2232_v44 = vmul.f32 0.5, %v3238_v40  ;;  %1446 = vmatmul.bf16.gmra.mxu3 %v3819_v23  ;;  %v3031_v37 = vld [vmem:[%s4748_s3 + $0xc] sm:$0xf] }
 0x12f   : > { %3241 = vtanh.f32 %v2015_v41  ;;  %v1330_v48 = vadd.f32 %v1329_v42, %v1281_v11  ;;  %1495 = vmatmul.bf16.gmra.mxu0 %v3816_v21 }
 0x130   : > { %v2344_v61 = vadd.f32 0.5, %v2232_v44  ;;  %1544 = vmatmul.bf16.gmra.mxu1 %v3819_v23  ;;  %v1300_v59 = vpop.f32.mrf.mxu2  ;;  %v2595_v44 = vor.u32 %v3031_v37, %v2592_v39 }
 0x131   : > { %v3240_v2 = vpop.eup %3239  ;;  %v1966_v36 = vmul.f32 0.5, %v1330_v48  ;;  %v1301_v0 = vadd.f32 %v1300_v59, %v4127_v57  ;;  %v1349_v58 = vpop.f32.mrf.mxu3  ;;  %v2599_v59 = vor.u32 %v3035_v35, %v2598_v51  ;;  %v3023_v51 = vor.u32 %v3137_v46, %v3020_v47 }
 0x132   : > { %2457 = vst [vmem:[%s4165_s20 + $0x1c0] sm:$0xff] %v2344_v61  ;;  %v2183_v3 = vmul.f32 0.5, %v3240_v2  ;;  %1567 = vmatpush.bf16.msra.mxu2 %v2595_v44  ;;  %v3091_v2 = vld [vmem:[%s4748_s3 + $0x1e8] sm:$0xf0] }
 0x133   : > { %3243 = vtanh.f32 %v1966_v36  ;;  %v1350_v9 = vadd.f32 %v1349_v58, %v1301_v0  ;;  %v2823_v58 = vor.u32 %v3091_v2, %v2822_v62  ;;  %1665 = vmatpush.bf16.msra.mxu0 %v2599_v59  ;;  %1805 = vmatpush.bf16.msrb.mxu3 %v3023_v51 }
 0x134   : > { %v2295_v49 = vadd.f32 0.5, %v2183_v3  ;;  %v1282_v16 = vpop.f32.mrf.mxu0 }
 0x135   : > { %v3242_v17 = vpop.eup %3241  ;;  %v2022_v60 = vmul.f32 0.5, %v1350_v9  ;;  %v1283_v14 = vadd.f32 %v1282_v16, %v4127_v57  ;;  %v1331_v4 = vpop.f32.mrf.mxu1  ;;  %1714 = vmatpush.bf16.msra.mxu1 %v2823_v58 }
 0x136   : > { %2408 = vst [vmem:[%s4165_s20 + $0x38] sm:$0xff] %v2295_v49  ;;  %v2239_v19 = vmul.f32 0.5, %v3242_v17 }
 0x137   : > { %3245 = vtanh.f32 %v2022_v60  ;;  %v1332_v25 = vadd.f32 %v1331_v4, %v1283_v14 }
 0x138   : > { %v2351_v18 = vadd.f32 0.5, %v2239_v19  ;;  %v1302_v22 = vpop.f32.mrf.mxu2 }
 0x139   : > { %v3244_v28 = vpop.eup %3243  ;;  %v1973_v5 = vmul.f32 0.5, %v1332_v25  ;;  %v1303_v29 = vadd.f32 %v1302_v22, %v4127_v57  ;;  %v1351_v31 = vpop.f32.mrf.mxu3 }
 0x13a   : > { %2464 = vst [vmem:[%s4165_s20 + $0x1f8] sm:$0xff] %v2351_v18  ;;  %v2190_v33 = vmul.f32 0.5, %v3244_v28 }
 0x13b   : > { %3247 = vtanh.f32 %v1973_v5  ;;  %v1352_v13 = vadd.f32 %v1351_v31, %v1303_v29 }
 0x13c   : > { %v2302_v32 = vadd.f32 0.5, %v2190_v33  ;;  %v1285_v34 = vpop.f32.mrf.mxu0 }
 0x13d   : > { %v3246_v40 = vpop.eup %3245  ;;  %v2029_v41 = vmul.f32 0.5, %v1352_v13  ;;  %v1286_v11 = vadd.f32 %v1285_v34, %v4127_v57  ;;  %v1334_v42 = vpop.f32.mrf.mxu1  ;;  %1402 = vmatmul.bf16.gmra.mxu2 %v3953_v1 }
 0x13e   : > { %2415 = vst [vmem:[%s4165_s20 + $0x70] sm:$0xff] %v2302_v32  ;;  %v2246_v48 = vmul.f32 0.5, %v3246_v40  ;;  %1451 = vmatmul.bf16.gmra.mxu3 %v3956_v8 }
 0x13f   : > { %3249 = vtanh.f32 %v2029_v41  ;;  %v1335_v61 = vadd.f32 %v1334_v42, %v1286_v11  ;;  %1500 = vmatmul.bf16.gmra.mxu0 %v3953_v1  ;;  %v3081_v41 = vld [vmem:[%s4748_s3 + $0x19c] sm:$0xf]  ;;  %v2796_v11 = vld [vmem:[%s4748_s3 + $0x1b4] sm:$0xf0] }
 0x140   : > { %v2358_v36 = vadd.f32 0.5, %v2246_v48  ;;  %1549 = vmatmul.bf16.gmra.mxu1 %v3956_v8  ;;  %v1305_v0 = vpop.f32.mrf.mxu2  ;;  %v2799_v44 = vor.u32 %v3081_v41, %v2796_v11  ;;  %v2768_v41 = vld [vmem:[%s4748_s3 + $0x17c] sm:$0xf0] }
 0x141   : > { %v3248_v3 = vpop.eup %3247  ;;  %v1980_v9 = vmul.f32 0.5, %v1335_v61  ;;  %v1306_v49 = vadd.f32 %v1305_v0, %v4127_v57  ;;  %v1354_v16 = vpop.f32.mrf.mxu3 }
 0x142   : > { %2471 = vst [vmem:[%s4165_s20 + $0x230] sm:$0xff] %v2358_v36  ;;  %v2197_v17 = vmul.f32 0.5, %v3248_v3  ;;  %1756 = vmatpush.bf16.msrb.mxu2 %v2799_v44  ;;  %v2992_v44 = vld [vmem:[%s4748_s3 + $0x33c] sm:$0xf0] }
 0x143   : > { %3251 = vtanh.f32 %v1980_v9  ;;  %v1355_v60 = vadd.f32 %v1354_v16, %v1306_v49 }
 0x144   : > { %v2309_v14 = vadd.f32 0.5, %v2197_v17  ;;  %v1287_v4 = vpop.f32.mrf.mxu0 }
 0x145   : > { %v3250_v19 = vpop.eup %3249  ;;  %v2036_v20 = vmul.f32 0.5, %v1355_v60  ;;  %v1288_v24 = vadd.f32 %v1287_v4, %v4127_v57  ;;  %v1336_v25 = vpop.f32.mrf.mxu1  ;;  %v2802_v60 = vld [vmem:[%s4748_s3 + $0x1a0] sm:$0xf] }
 0x146   : > { %2422 = vst [vmem:[%s4165_s20 + $0xa8] sm:$0xff] %v2309_v14  ;;  %v2253_v26 = vmul.f32 0.5, %v3250_v19  ;;  %v3085_v14 = vld [vmem:[%s4748_s3 + $0x1b8] sm:$0xf0] }
 0x147   : > { %3253 = vtanh.f32 %v2036_v20  ;;  %v1337_v7 = vadd.f32 %v1336_v25, %v1288_v24  ;;  %v2803_v19 = vor.u32 %v3085_v14, %v2802_v60  ;;  %v3026_v20 = vld [vmem:[%s4748_s3 + $0x360] sm:$0xf]  ;;  %v3141_v24 = vld [vmem:[%s4748_s3 + $0x378] sm:$0xf0] }
 0x148   : > { %v2365_v15 = vadd.f32 0.5, %v2253_v26  ;;  %v1307_v18 = vpop.f32.mrf.mxu2 }
 0x149   : > { %v3252_v22 = vpop.eup %3251  ;;  %v1987_v27 = vmul.f32 0.5, %v1337_v7  ;;  %v1308_v28 = vadd.f32 %v1307_v18, %v4127_v57  ;;  %v1356_v5 = vpop.f32.mrf.mxu3  ;;  %v3027_v7 = vor.u32 %v3141_v24, %v3026_v20  ;;  %1854 = vmatpush.bf16.msrb.mxu0 %v2803_v19  ;;  %v3134_v19 = vld [vmem:[%s4748_s3 + $0x340] sm:$0xf0] }
 0x14a   : > { %2478 = vst [vmem:[%s4165_s20 + $0x268] sm:$0xff] %v2365_v15  ;;  %v2204_v29 = vmul.f32 0.5, %v3252_v22 }
 0x14b   : > { %3255 = vtanh.f32 %v1987_v27  ;;  %v1357_v31 = vadd.f32 %v1356_v5, %v1308_v28  ;;  %v4275_v28 = vperm.slane %v4112_v45, 2  ;;  %1903 = vmatpush.bf16.msrb.mxu1 %v3027_v7 }
 0x14c   : > { %v2316_v33 = vadd.f32 0.5, %v2204_v29  ;;  %v1290_v13 = vpop.f32.mrf.mxu0 }
 0x14d   : > { %v3254_v32 = vpop.eup %3253  ;;  %v2043_v34 = vmul.f32 0.5, %v1357_v31  ;;  %v1291_v37 = vadd.f32 %v1290_v13, %v4127_v57  ;;  %v1339_v39 = vpop.f32.mrf.mxu1  ;;  %1407 = vmatmul.bf16.gmra.mxu2 %v3997_v50 }
 0x14e   : > { %2429 = vst [vmem:[%s4165_s20 + $0xe0] sm:$0xff] %v2316_v33  ;;  %v2260_v40 = vmul.f32 0.5, %v3254_v32  ;;  %1456 = vmatmul.bf16.gmra.mxu3 %v3999_v53 }
 0x14f   : > { %3257 = vtanh.f32 %v2043_v34  ;;  %v1340_v42 = vadd.f32 %v1339_v39, %v1291_v37  ;;  %1505 = vmatmul.bf16.gmra.mxu0 %v3997_v50 }
 0x150   : > { %v2372_v48 = vadd.f32 0.5, %v2260_v40  ;;  %1554 = vmatmul.bf16.gmra.mxu1 %v3999_v53  ;;  %v1310_v6 = vpop.f32.mrf.mxu2  ;;  %v3074_v40 = vld [vmem:[%s4748_s3 + $0x164] sm:$0xf] }
 0x151   : > { %v3256_v35 = vpop.eup %3255  ;;  %v1994_v61 = vmul.f32 0.5, %v1340_v42  ;;  %v1311_v59 = vadd.f32 %v1310_v6, %v4127_v57  ;;  %v1359_v62 = vpop.f32.mrf.mxu3  ;;  %v2771_v42 = vor.u32 %v3074_v40, %v2768_v41 }
 0x152   : > { %2485 = vst [vmem:[%s4165_s20 + $0x2a0] sm:$0xff] %v2372_v48  ;;  %v2211_v2 = vmul.f32 0.5, %v3256_v35 }
 0x153   : > { %3259 = vtanh.f32 %v1994_v61  ;;  %v1360_v36 = vadd.f32 %v1359_v62, %v1311_v59  ;;  %1757 = vmatpush.bf16.msrb.mxu2 %v2771_v42  ;;  %v2964_v42 = vld [vmem:[%s4748_s3 + $0x304] sm:$0xf0] }
 0x154   : > { %v2323_v0 = vadd.f32 0.5, %v2211_v2  ;;  %v1292_v58 = vpop.f32.mrf.mxu0 }
 0x155   : > { %v3258_v3 = vpop.eup %3257  ;;  %v2050_v9 = vmul.f32 0.5, %v1360_v36  ;;  %v1293_v49 = vadd.f32 %v1292_v58, %v4127_v57  ;;  %v1341_v16 = vpop.f32.mrf.mxu1 }
 0x156   : > { %2436 = vst [vmem:[%s4165_s20 + $0x118] sm:$0xff] %v2323_v0  ;;  %v2267_v17 = vmul.f32 0.5, %v3258_v3 }
 0x157   : > { %3261 = vtanh.f32 %v2050_v9  ;;  %v1342_v4 = vadd.f32 %v1341_v16, %v1293_v49  ;;  %v2774_v16 = vld [vmem:[%s4748_s3 + $0x168] sm:$0xf] }
 0x158   : > { %v2379_v25 = vadd.f32 0.5, %v2267_v17  ;;  %v1312_v26 = vpop.f32.mrf.mxu2  ;;  %v3078_v17 = vld [vmem:[%s4748_s3 + $0x180] sm:$0xf0] }
 0x159   : > { %v3260_v15 = vpop.eup %3259  ;;  %v2001_v18 = vmul.f32 0.5, %v1342_v4  ;;  %v1313_v22 = vadd.f32 %v1312_v26, %v4127_v57  ;;  %v1361_v27 = vpop.f32.mrf.mxu3  ;;  %v4281_v57 = vperm.slane %v4112_v45, 1  ;;  %v3130_v45 = vld [vmem:[%s4748_s3 + $0x324] sm:$0xf]  ;;  %v2775_v14 = vor.u32 %v3078_v17, %v2774_v16  ;;  %v2998_v4 = vld [vmem:[%s4748_s3 + $0x328] sm:$0xf] }
 0x15a   : > { %2492 = vst [vmem:[%s4165_s20 + $0x2d8] sm:$0xff] %v2379_v25  ;;  %v2218_v5 = vmul.f32 0.5, %v3260_v15  ;;  %v2995_v48 = vor.u32 %v3130_v45, %v2992_v44  ;;  %v2999_v25 = vor.u32 %v3134_v19, %v2998_v4 }
 0x15b   : > { %3263 = vtanh.f32 %v2001_v18  ;;  %v1362_v29 = vadd.f32 %v1361_v27, %v1313_v22  ;;  %1855 = vmatpush.bf16.msrb.mxu0 %v2775_v14  ;;  %v3127_v14 = vld [vmem:[%s4748_s3 + $0x308] sm:$0xf0] }
 0x15c   : > { %v2330_v31 = vadd.f32 0.5, %v2218_v5  ;;  %v1471_v33 = vpop.f32.mrf.mxu0  ;;  %1806 = vmatpush.bf16.msrb.mxu3 %v2995_v48  ;;  %1904 = vmatpush.bf16.msrb.mxu1 %v2999_v25 }
 0x15d   : > { %v3262_v13 = vpop.eup %3261  ;;  %v2057_v32 = vmul.f32 0.5, %v1362_v29  ;;  %v1472_v34 = vadd.f32 %v1471_v33, %v4275_v28  ;;  %v1520_v37 = vpop.f32.mrf.mxu1  ;;  %1568 = vmatmul.bf16.vlgmr.msra.gmra.mxu2 %v3718_v63 }
 0x15e   : > { %2443 = vst [vmem:[%s4165_s20 + $0x150] sm:$0xff] %v2330_v31  ;;  %v2274_v39 = vmul.f32 0.5, %v3262_v13  ;;  %1617 = vmatmul.bf16.vlgmr.msra.gmra.mxu3 %v3731_v10 }
 0x15f   : > { %3265 = vtanh.f32 %v2057_v32  ;;  %v1521_v11 = vadd.f32 %v1520_v37, %v1472_v34  ;;  %1666 = vmatmul.bf16.vlgmr.msra.gmra.mxu0 %v3718_v63  ;;  %v3067_v37 = vld [vmem:[%s4748_s3 + $0x12c] sm:$0xf] }
 0x160   : > { %v2386_v46 = vadd.f32 0.5, %v2274_v39  ;;  %1715 = vmatmul.bf16.vlgmr.msra.gmra.mxu1 %v3731_v10  ;;  %v1373_v47 = vpop.f32.mrf.mxu2  ;;  %v2740_v39 = vld [vmem:[%s4748_s3 + $0x144] sm:$0xf0] }
 0x161   : > { %v3264_v6 = vpop.eup %3263  ;;  %v1954_v51 = vmul.f32 0.5, %v1521_v11  ;;  %v1374_v35 = vadd.f32 %v1373_v47, %v4281_v57  ;;  %v1422_v61 = vpop.f32.mrf.mxu3  ;;  %v2743_v41 = vor.u32 %v3067_v37, %v2740_v39  ;;  %v3123_v11 = vld [vmem:[%s4748_s3 + $0x2ec] sm:$0xf] }
 0x162   : > { %2499 = vst [vmem:[%s4165_s20 + $0x310] sm:$0xff] %v2386_v46  ;;  %v2225_v59 = vmul.f32 0.5, %v3264_v6  ;;  %v2967_v46 = vor.u32 %v3123_v11, %v2964_v42 }
 0x163   : > { %3267 = vtanh.f32 %v1954_v51  ;;  %v1423_v62 = vadd.f32 %v1422_v61, %v1374_v35  ;;  %1758 = vmatpush.bf16.msrb.mxu2 %v2743_v41  ;;  %v2936_v41 = vld [vmem:[%s4748_s3 + $0x2cc] sm:$0xf0] }
 0x164   : > { %v2337_v2 = vadd.f32 0.5, %v2225_v59  ;;  %v1473_v36 = vpop.f32.mrf.mxu0  ;;  %1807 = vmatpush.bf16.msrb.mxu3 %v2967_v46 }
 0x165   : > { %v3266_v0 = vpop.eup %3265  ;;  %v1953_v58 = vmul.f32 0.5, %v1423_v62  ;;  %v1474_v3 = vadd.f32 %v1473_v36, %v4275_v28  ;;  %v1522_v9 = vpop.f32.mrf.mxu1 }
 0x166   : > { %2450 = vst [vmem:[%s4165_s20 + $0x188] sm:$0xff] %v2337_v2  ;;  %v2281_v49 = vmul.f32 0.5, %v3266_v0 }
 0x167   : > { %3269 = vtanh.f32 %v1953_v58  ;;  %v1523_v60 = vadd.f32 %v1522_v9, %v1474_v3  ;;  %v2746_v9 = vld [vmem:[%s4748_s3 + $0x130] sm:$0xf] }
 0x168   : > { %v2393_v20 = vadd.f32 0.5, %v2281_v49  ;;  %v1375_v24 = vpop.f32.mrf.mxu2  ;;  %v3071_v49 = vld [vmem:[%s4748_s3 + $0x148] sm:$0xf0] }
 0x169   : > { %v3268_v26 = vpop.eup %3267  ;;  %v1961_v7 = vmul.f32 0.5, %v1523_v60  ;;  %v1376_v15 = vadd.f32 %v1375_v24, %v4281_v57  ;;  %v1424_v18 = vpop.f32.mrf.mxu3  ;;  %v2747_v17 = vor.u32 %v3071_v49, %v2746_v9  ;;  %v2970_v60 = vld [vmem:[%s4748_s3 + $0x2f0] sm:$0xf] }
 0x16a   : > { %2506 = vst [vmem:[%s4165_s20 + $0x348] sm:$0xff] %v2393_v20  ;;  %v2178_v22 = vmul.f32 0.5, %v3268_v26  ;;  %v2971_v20 = vor.u32 %v3127_v14, %v2970_v60 }
 0x16b   : > { %3271 = vtanh.f32 %v1961_v7  ;;  %v1425_v27 = vadd.f32 %v1424_v18, %v1376_v15  ;;  %1856 = vmatpush.bf16.msrb.mxu0 %v2747_v17  ;;  %v3120_v17 = vld [vmem:[%s4748_s3 + $0x2d0] sm:$0xf0] }
 0x16c   : > { %v2290_v5 = vadd.f32 0.5, %v2178_v22  ;;  %v1476_v29 = vpop.f32.mrf.mxu0  ;;  %1905 = vmatpush.bf16.msrb.mxu1 %v2971_v20 }
 0x16d   : > { %v3270_v31 = vpop.eup %3269  ;;  %v1960_v33 = vmul.f32 0.5, %v1425_v27  ;;  %v1477_v13 = vadd.f32 %v1476_v29, %v4275_v28  ;;  %v1525_v32 = vpop.f32.mrf.mxu1  ;;  %1573 = vmatmul.bf16.gmra.mxu2 %v3839_v30 }
 0x16e   : > { %2402 = vst [vmem:[%s4165_s20 + $0x10] sm:$0xff] %v2290_v5  ;;  %v2177_v34 = vmul.f32 0.5, %v3270_v31  ;;  %1622 = vmatmul.bf16.gmra.mxu3 %v3849_v38 }
 0x16f   : > { %3273 = vtanh.f32 %v1960_v33  ;;  %v1526_v40 = vadd.f32 %v1525_v32, %v1477_v13  ;;  %1671 = vmatmul.bf16.gmra.mxu0 %v3839_v30  ;;  %v3060_v32 = vld [vmem:[%s4748_s3 + $0xf4] sm:$0xf] }
 0x170   : > { %v2289_v45 = vadd.f32 0.5, %v2177_v34  ;;  %1720 = vmatmul.bf16.gmra.mxu1 %v3849_v38  ;;  %v1378_v44 = vpop.f32.mrf.mxu2  ;;  %v2712_v34 = vld [vmem:[%s4748_s3 + $0x10c] sm:$0xf0] }
 0x171   : > { %v3272_v47 = vpop.eup %3271  ;;  %v1968_v48 = vmul.f32 0.5, %v1526_v40  ;;  %v1379_v6 = vadd.f32 %v1378_v44, %v4281_v57  ;;  %v1427_v51 = vpop.f32.mrf.mxu3  ;;  %v2715_v39 = vor.u32 %v3060_v32, %v2712_v34  ;;  %v3116_v40 = vld [vmem:[%s4748_s3 + $0x2b4] sm:$0xf] }
 0x172   : > { %2401 = vst [vmem:[%s4165_s20 + $0x8] sm:$0xff] %v2289_v45  ;;  %v2185_v35 = vmul.f32 0.5, %v3272_v47  ;;  %v2939_v45 = vor.u32 %v3116_v40, %v2936_v41 }
 0x173   : > { %3275 = vtanh.f32 %v1968_v48  ;;  %v1428_v61 = vadd.f32 %v1427_v51, %v1379_v6  ;;  %1759 = vmatpush.bf16.msrb.mxu2 %v2715_v39  ;;  %v2908_v39 = vld [vmem:[%s4748_s3 + $0x294] sm:$0xf0] }
 0x174   : > { %v2297_v59 = vadd.f32 0.5, %v2185_v35  ;;  %v1478_v62 = vpop.f32.mrf.mxu0  ;;  %1808 = vmatpush.bf16.msrb.mxu3 %v2939_v45 }
 0x175   : > { %v3274_v2 = vpop.eup %3273  ;;  %v1967_v36 = vmul.f32 0.5, %v1428_v61  ;;  %v1479_v0 = vadd.f32 %v1478_v62, %v4275_v28  ;;  %v1527_v58 = vpop.f32.mrf.mxu1 }
 0x176   : > { %2410 = vst [vmem:[%s4165_s20 + $0x48] sm:$0xff] %v2297_v59  ;;  %v2184_v3 = vmul.f32 0.5, %v3274_v2 }
 0x177   : > { %3277 = vtanh.f32 %v1967_v36  ;;  %v1528_v16 = vadd.f32 %v1527_v58, %v1479_v0  ;;  %v2718_v58 = vld [vmem:[%s4748_s3 + $0xf8] sm:$0xf] }
 0x178   : > { %v2296_v4 = vadd.f32 0.5, %v2184_v3  ;;  %v1380_v19 = vpop.f32.mrf.mxu2  ;;  %v3064_v3 = vld [vmem:[%s4748_s3 + $0x110] sm:$0xf0] }
 0x179   : > { %v3276_v24 = vpop.eup %3275  ;;  %v1975_v25 = vmul.f32 0.5, %v1528_v16  ;;  %v1381_v26 = vadd.f32 %v1380_v19, %v4281_v57  ;;  %v1429_v7 = vpop.f32.mrf.mxu3  ;;  %v2719_v49 = vor.u32 %v3064_v3, %v2718_v58  ;;  %v2942_v16 = vld [vmem:[%s4748_s3 + $0x2b8] sm:$0xf] }
 0x17a   : > { %2409 = vst [vmem:[%s4165_s20 + $0x40] sm:$0xff] %v2296_v4  ;;  %v2192_v15 = vmul.f32 0.5, %v3276_v24  ;;  %v2943_v4 = vor.u32 %v3120_v17, %v2942_v16 }
 0x17b   : > { %3279 = vtanh.f32 %v1975_v25  ;;  %v1430_v18 = vadd.f32 %v1429_v7, %v1381_v26  ;;  %1857 = vmatpush.bf16.msrb.mxu0 %v2719_v49  ;;  %v3113_v49 = vld [vmem:[%s4748_s3 + $0x298] sm:$0xf0] }
 0x17c   : > { %v2304_v22 = vadd.f32 0.5, %v2192_v15  ;;  %v1481_v27 = vpop.f32.mrf.mxu0  ;;  %1906 = vmatpush.bf16.msrb.mxu1 %v2943_v4 }
 0x17d   : > { %v3278_v5 = vpop.eup %3277  ;;  %v1974_v29 = vmul.f32 0.5, %v1430_v18  ;;  %v1482_v31 = vadd.f32 %v1481_v27, %v4275_v28  ;;  %v1530_v33 = vpop.f32.mrf.mxu1  ;;  %1578 = vmatmul.bf16.gmra.mxu2 %v3964_v43 }
 0x17e   : > { %2417 = vst [vmem:[%s4165_s20 + $0x80] sm:$0xff] %v2304_v22  ;;  %v2191_v13 = vmul.f32 0.5, %v3278_v5  ;;  %1627 = vmatmul.bf16.gmra.mxu3 %v3968_v12 }
 0x17f   : > { %3281 = vtanh.f32 %v1974_v29  ;;  %v1531_v37 = vadd.f32 %v1530_v33, %v1482_v31  ;;  %1676 = vmatmul.bf16.gmra.mxu0 %v3964_v43  ;;  %v3053_v33 = vld [vmem:[%s4748_s3 + $0xbc] sm:$0xf] }
 0x180   : > { %v2303_v11 = vadd.f32 0.5, %v2191_v13  ;;  %1725 = vmatmul.bf16.gmra.mxu1 %v3968_v12  ;;  %v1383_v42 = vpop.f32.mrf.mxu2  ;;  %v2684_v13 = vld [vmem:[%s4748_s3 + $0xd4] sm:$0xf0] }
 0x181   : > { %v3280_v44 = vpop.eup %3279  ;;  %v1982_v46 = vmul.f32 0.5, %v1531_v37  ;;  %v1384_v47 = vadd.f32 %v1383_v42, %v4281_v57  ;;  %v1432_v48 = vpop.f32.mrf.mxu3  ;;  %v2687_v34 = vor.u32 %v3053_v33, %v2684_v13  ;;  %v3109_v37 = vld [vmem:[%s4748_s3 + $0x27c] sm:$0xf] }
 0x182   : > { %2416 = vst [vmem:[%s4165_s20 + $0x78] sm:$0xff] %v2303_v11  ;;  %v2199_v6 = vmul.f32 0.5, %v3280_v44  ;;  %v2911_v11 = vor.u32 %v3109_v37, %v2908_v39 }
 0x183   : > { %3283 = vtanh.f32 %v1982_v46  ;;  %v1433_v51 = vadd.f32 %v1432_v48, %v1384_v47  ;;  %1760 = vmatpush.bf16.msrb.mxu2 %v2687_v34  ;;  %v2880_v34 = vld [vmem:[%s4748_s3 + $0x25c] sm:$0xf0] }
 0x184   : > { %v2311_v35 = vadd.f32 0.5, %v2199_v6  ;;  %v1483_v61 = vpop.f32.mrf.mxu0  ;;  %1809 = vmatpush.bf16.msrb.mxu3 %v2911_v11 }
 0x185   : > { %v3282_v59 = vpop.eup %3281  ;;  %v1981_v62 = vmul.f32 0.5, %v1433_v51  ;;  %v1484_v2 = vadd.f32 %v1483_v61, %v4275_v28  ;;  %v1532_v36 = vpop.f32.mrf.mxu1 }
 0x186   : > { %2424 = vst [vmem:[%s4165_s20 + $0xb8] sm:$0xff] %v2311_v35  ;;  %v2198_v0 = vmul.f32 0.5, %v3282_v59 }
 0x187   : > { %3285 = vtanh.f32 %v1981_v62  ;;  %v1533_v9 = vadd.f32 %v1532_v36, %v1484_v2  ;;  %v2690_v36 = vld [vmem:[%s4748_s3 + $0xc0] sm:$0xf] }
 0x188   : > { %v2310_v60 = vadd.f32 0.5, %v2198_v0  ;;  %v1385_v14 = vpop.f32.mrf.mxu2  ;;  %v3057_v0 = vld [vmem:[%s4748_s3 + $0xd8] sm:$0xf0] }
 0x189   : > { %v3284_v19 = vpop.eup %3283  ;;  %v1989_v20 = vmul.f32 0.5, %v1533_v9  ;;  %v1386_v24 = vadd.f32 %v1385_v14, %v4281_v57  ;;  %v1434_v25 = vpop.f32.mrf.mxu3  ;;  %v2691_v3 = vor.u32 %v3057_v0, %v2690_v36  ;;  %v2914_v9 = vld [vmem:[%s4748_s3 + $0x280] sm:$0xf] }
 0x18a   : > { %2423 = vst [vmem:[%s4165_s20 + $0xb0] sm:$0xff] %v2310_v60  ;;  %v2206_v26 = vmul.f32 0.5, %v3284_v19  ;;  %v2915_v60 = vor.u32 %v3113_v49, %v2914_v9 }
 0x18b   : > { %3287 = vtanh.f32 %v1989_v20  ;;  %v1435_v7 = vadd.f32 %v1434_v25, %v1386_v24  ;;  %1858 = vmatpush.bf16.msrb.mxu0 %v2691_v3  ;;  %v3106_v3 = vld [vmem:[%s4748_s3 + $0x260] sm:$0xf0] }
 0x18c   : > { %v2318_v15 = vadd.f32 0.5, %v2206_v26  ;;  %v1486_v18 = vpop.f32.mrf.mxu0  ;;  %1907 = vmatpush.bf16.msrb.mxu1 %v2915_v60 }
 0x18d   : > { %v3286_v22 = vpop.eup %3285  ;;  %v1988_v27 = vmul.f32 0.5, %v1435_v7  ;;  %v1487_v5 = vadd.f32 %v1486_v18, %v4275_v28  ;;  %v1535_v29 = vpop.f32.mrf.mxu1  ;;  %1583 = vmatmul.bf16.gmra.mxu2 %v4001_v54 }
 0x18e   : > { %2431 = vst [vmem:[%s4165_s20 + $0xf0] sm:$0xff] %v2318_v15  ;;  %v2205_v31 = vmul.f32 0.5, %v3286_v22  ;;  %1632 = vmatmul.bf16.gmra.mxu3 %v4004_v56 }
 0x18f   : > { %3289 = vtanh.f32 %v1988_v27  ;;  %v1536_v32 = vadd.f32 %v1535_v29, %v1487_v5  ;;  %1681 = vmatmul.bf16.gmra.mxu0 %v4001_v54  ;;  %v3046_v29 = vld [vmem:[%s4748_s3 + $0x84] sm:$0xf] }
 0x190   : > { %v2317_v40 = vadd.f32 0.5, %v2205_v31  ;;  %1730 = vmatmul.bf16.gmra.mxu1 %v4004_v56  ;;  %v1388_v41 = vpop.f32.mrf.mxu2  ;;  %v2656_v31 = vld [vmem:[%s4748_s3 + $0x9c] sm:$0xf0] }
 0x191   : > { %v3288_v42 = vpop.eup %3287  ;;  %v1996_v45 = vmul.f32 0.5, %v1536_v32  ;;  %v1389_v44 = vadd.f32 %v1388_v41, %v4281_v57  ;;  %v1437_v46 = vpop.f32.mrf.mxu3  ;;  %v2659_v13 = vor.u32 %v3046_v29, %v2656_v31  ;;  %v3102_v32 = vld [vmem:[%s4748_s3 + $0x244] sm:$0xf] }
 0x192   : > { %2430 = vst [vmem:[%s4165_s20 + $0xe8] sm:$0xff] %v2317_v40  ;;  %v2213_v47 = vmul.f32 0.5, %v3288_v42  ;;  %v2883_v40 = vor.u32 %v3102_v32, %v2880_v34 }
 0x193   : > { %3291 = vtanh.f32 %v1996_v45  ;;  %v1438_v48 = vadd.f32 %v1437_v46, %v1389_v44  ;;  %1761 = vmatpush.bf16.msrb.mxu2 %v2659_v13  ;;  %v2852_v13 = vld [vmem:[%s4748_s3 + $0x224] sm:$0xf0] }
 0x194   : > { %v2325_v6 = vadd.f32 0.5, %v2213_v47  ;;  %v1488_v51 = vpop.f32.mrf.mxu0  ;;  %1810 = vmatpush.bf16.msrb.mxu3 %v2883_v40 }
 0x195   : > { %v3290_v35 = vpop.eup %3289  ;;  %v1995_v61 = vmul.f32 0.5, %v1438_v48  ;;  %v1489_v59 = vadd.f32 %v1488_v51, %v4275_v28  ;;  %v1537_v62 = vpop.f32.mrf.mxu1 }
 0x196   : > { %2438 = vst [vmem:[%s4165_s20 + $0x128] sm:$0xff] %v2325_v6  ;;  %v2212_v2 = vmul.f32 0.5, %v3290_v35 }
 0x197   : > { %3293 = vtanh.f32 %v1995_v61  ;;  %v1538_v58 = vadd.f32 %v1537_v62, %v1489_v59  ;;  %v2662_v62 = vld [vmem:[%s4748_s3 + $0x88] sm:$0xf] }
 0x198   : > { %v2324_v16 = vadd.f32 0.5, %v2212_v2  ;;  %v1390_v17 = vpop.f32.mrf.mxu2  ;;  %v3050_v2 = vld [vmem:[%s4748_s3 + $0xa0] sm:$0xf0] }
 0x199   : > { %v3292_v14 = vpop.eup %3291  ;;  %v2003_v4 = vmul.f32 0.5, %v1538_v58  ;;  %v1391_v19 = vadd.f32 %v1390_v17, %v4281_v57  ;;  %v1439_v20 = vpop.f32.mrf.mxu3  ;;  %v2663_v0 = vor.u32 %v3050_v2, %v2662_v62  ;;  %v2886_v58 = vld [vmem:[%s4748_s3 + $0x248] sm:$0xf] }
 0x19a   : > { %2437 = vst [vmem:[%s4165_s20 + $0x120] sm:$0xff] %v2324_v16  ;;  %v2220_v24 = vmul.f32 0.5, %v3292_v14  ;;  %v2887_v16 = vor.u32 %v3106_v3, %v2886_v58 }
 0x19b   : > { %3295 = vtanh.f32 %v2003_v4  ;;  %v1440_v25 = vadd.f32 %v1439_v20, %v1391_v19  ;;  %1859 = vmatpush.bf16.msrb.mxu0 %v2663_v0  ;;  %v3099_v0 = vld [vmem:[%s4748_s3 + $0x228] sm:$0xf0] }
 0x19c   : > { %v2332_v26 = vadd.f32 0.5, %v2220_v24  ;;  %v1491_v7 = vpop.f32.mrf.mxu0  ;;  %1908 = vmatpush.bf16.msrb.mxu1 %v2887_v16 }
 0x19d   : > { %v3294_v15 = vpop.eup %3293  ;;  %v2002_v18 = vmul.f32 0.5, %v1440_v25  ;;  %v1492_v22 = vadd.f32 %v1491_v7, %v4275_v28  ;;  %v1540_v27 = vpop.f32.mrf.mxu1  ;;  %1588 = vmatmul.bf16.gmra.mxu2 %v3707_v52 }
 0x19e   : > { %2445 = vst [vmem:[%s4165_s20 + $0x160] sm:$0xff] %v2332_v26  ;;  %v2219_v5 = vmul.f32 0.5, %v3294_v15  ;;  %1637 = vmatmul.bf16.gmra.mxu3 %v3709_v55 }
 0x19f   : > { %3297 = vtanh.f32 %v2002_v18  ;;  %v1541_v33 = vadd.f32 %v1540_v27, %v1492_v22  ;;  %1686 = vmatmul.bf16.gmra.mxu0 %v3707_v52  ;;  %v3039_v27 = vld [vmem:[%s4748_s3 + $0x4c] sm:$0xf] }
 0x1a0   : > { %v2331_v37 = vadd.f32 0.5, %v2219_v5  ;;  %1735 = vmatmul.bf16.gmra.mxu1 %v3709_v55  ;;  %v1393_v39 = vpop.f32.mrf.mxu2  ;;  %v2628_v5 = vld [vmem:[%s4748_s3 + $0x64] sm:$0xf0] }
 0x1a1   : > { %v3296_v41 = vpop.eup %3295  ;;  %v2010_v11 = vmul.f32 0.5, %v1541_v33  ;;  %v1394_v42 = vadd.f32 %v1393_v39, %v4281_v57  ;;  %v1442_v45 = vpop.f32.mrf.mxu3  ;;  %v2631_v31 = vor.u32 %v3039_v27, %v2628_v5  ;;  %v3095_v33 = vld [vmem:[%s4748_s3 + $0x20c] sm:$0xf]  ;;  %v3088_v27 = vld [vmem:[%s4748_s3 + $0x1d4] sm:$0xf] }
 0x1a2   : > { %2444 = vst [vmem:[%s4165_s20 + $0x158] sm:$0xff] %v2331_v37  ;;  %v2227_v44 = vmul.f32 0.5, %v3296_v41  ;;  %v2855_v37 = vor.u32 %v3095_v33, %v2852_v13  ;;  %v2824_v5 = vld [vmem:[%s4748_s3 + $0x1ec] sm:$0xf0]  ;;  %v2606_v33 = vld [vmem:[%s4748_s3 + $0x18] sm:$0xf] }
 0x1a3   : > { %3299 = vtanh.f32 %v2010_v11  ;;  %v1443_v46 = vadd.f32 %v1442_v45, %v1394_v42  ;;  %1762 = vmatpush.bf16.msrb.mxu2 %v2631_v31  ;;  %v2827_v31 = vor.u32 %v3088_v27, %v2824_v5  ;;  %v3036_v13 = vld [vmem:[%s4748_s3 + $0x30] sm:$0xf0] }
 0x1a4   : > { %v2339_v47 = vadd.f32 0.5, %v2227_v44  ;;  %v1493_v48 = vpop.f32.mrf.mxu0  ;;  %1811 = vmatpush.bf16.msrb.mxu3 %v2855_v37  ;;  %v2830_v37 = vld [vmem:[%s4748_s3 + $0x1d8] sm:$0xf] }
 0x1a5   : > { %v3298_v6 = vpop.eup %3297  ;;  %v2009_v51 = vmul.f32 0.5, %v1443_v46  ;;  %v1494_v35 = vadd.f32 %v1493_v48, %v4275_v28  ;;  %v1542_v61 = vpop.f32.mrf.mxu1 }
 0x1a6   : > { %2452 = vst [vmem:[%s4165_s20 + $0x198] sm:$0xff] %v2339_v47  ;;  %v2226_v59 = vmul.f32 0.5, %v3298_v6 }
 0x1a7   : > { %3301 = vtanh.f32 %v2009_v51  ;;  %v1543_v36 = vadd.f32 %v1542_v61, %v1494_v35  ;;  %v2634_v61 = vld [vmem:[%s4748_s3 + $0x50] sm:$0xf] }
 0x1a8   : > { %v2338_v9 = vadd.f32 0.5, %v2226_v59  ;;  %v1395_v49 = vpop.f32.mrf.mxu2  ;;  %v3043_v59 = vld [vmem:[%s4748_s3 + $0x68] sm:$0xf0]  ;;  %1812 = vmatpush.bf16.msrb.mxu3 %v2827_v31 }
 0x1a9   : > { %v3300_v17 = vpop.eup %3299  ;;  %v2017_v60 = vmul.f32 0.5, %v1543_v36  ;;  %v1396_v14 = vadd.f32 %v1395_v49, %v4281_v57  ;;  %v1444_v4 = vpop.f32.mrf.mxu3  ;;  %v2635_v2 = vor.u32 %v3043_v59, %v2634_v61  ;;  %v2858_v36 = vld [vmem:[%s4748_s3 + $0x210] sm:$0xf] }
 0x1aa   : > { %2451 = vst [vmem:[%s4165_s20 + $0x190] sm:$0xff] %v2338_v9  ;;  %v2234_v19 = vmul.f32 0.5, %v3300_v17  ;;  %v2859_v9 = vor.u32 %v3099_v0, %v2858_v36 }
 0x1ab   : > { %3303 = vtanh.f32 %v2017_v60  ;;  %v1445_v20 = vadd.f32 %v1444_v4, %v1396_v14  ;;  %1860 = vmatpush.bf16.msrb.mxu0 %v2635_v2 }
 0x1ac   : > { %v2346_v24 = vadd.f32 0.5, %v2234_v19  ;;  %v1496_v25 = vpop.f32.mrf.mxu0  ;;  %1909 = vmatpush.bf16.msrb.mxu1 %v2859_v9 }
 0x1ad   : > { %v3302_v26 = vpop.eup %3301  ;;  %v2016_v7 = vmul.f32 0.5, %v1445_v20  ;;  %v1497_v15 = vadd.f32 %v1496_v25, %v4275_v28  ;;  %v1545_v18 = vpop.f32.mrf.mxu1  ;;  %1593 = vmatmul.bf16.gmra.mxu2 %v3816_v21  ;;  %v2600_v25 = vld [vmem:[%s4748_s3 + $0x2c] sm:$0xf0] }
 0x1ae   : > { %2459 = vst [vmem:[%s4165_s20 + $0x1d0] sm:$0xff] %v2346_v24  ;;  %v2233_v22 = vmul.f32 0.5, %v3302_v26  ;;  %1642 = vmatmul.bf16.gmra.mxu3 %v3819_v23  ;;  %v3032_v24 = vld [vmem:[%s4748_s3 + $0x14] sm:$0xf] }
 0x1af   : > { %3305 = vtanh.f32 %v2016_v7  ;;  %v1546_v29 = vadd.f32 %v1545_v18, %v1497_v15  ;;  %1691 = vmatmul.bf16.gmra.mxu0 %v3816_v21 }
 0x1b0   : > { %v2345_v32 = vadd.f32 0.5, %v2233_v22  ;;  %1740 = vmatmul.bf16.gmra.mxu1 %v3819_v23  ;;  %v1398_v34 = vpop.f32.mrf.mxu2  ;;  %v2603_v22 = vor.u32 %v3032_v24, %v2600_v25 }
 0x1b1   : > { %v3304_v39 = vpop.eup %3303  ;;  %v2024_v40 = vmul.f32 0.5, %v1546_v29  ;;  %v1399_v41 = vadd.f32 %v1398_v34, %v4281_v57  ;;  %v1447_v11 = vpop.f32.mrf.mxu3  ;;  %v2607_v34 = vor.u32 %v3036_v13, %v2606_v33 }
 0x1b2   : > { %2458 = vst [vmem:[%s4165_s20 + $0x1c8] sm:$0xff] %v2345_v32  ;;  %v2241_v42 = vmul.f32 0.5, %v3304_v39  ;;  %1763 = vmatpush.bf16.msrb.mxu2 %v2603_v22  ;;  %v3092_v39 = vld [vmem:[%s4748_s3 + $0x1f0] sm:$0xf0] }
 0x1b3   : > { %3307 = vtanh.f32 %v2024_v40  ;;  %v1448_v45 = vadd.f32 %v1447_v11, %v1399_v41  ;;  %v2831_v11 = vor.u32 %v3092_v39, %v2830_v37  ;;  %1861 = vmatpush.bf16.msrb.mxu0 %v2607_v34 }
 0x1b4   : > { %v2353_v44 = vadd.f32 0.5, %v2241_v42  ;;  %v1498_v46 = vpop.f32.mrf.mxu0 }
 0x1b5   : > { %v3306_v47 = vpop.eup %3305  ;;  %v2023_v48 = vmul.f32 0.5, %v1448_v45  ;;  %v1499_v6 = vadd.f32 %v1498_v46, %v4275_v28  ;;  %v1547_v51 = vpop.f32.mrf.mxu1  ;;  %1910 = vmatpush.bf16.msrb.mxu1 %v2831_v11 }
 0x1b6   : > { %2466 = vst [vmem:[%s4165_s20 + $0x208] sm:$0xff] %v2353_v44  ;;  %v2240_v35 = vmul.f32 0.5, %v3306_v47 }
 0x1b7   : > { %3309 = vtanh.f32 %v2023_v48  ;;  %v1548_v62 = vadd.f32 %v1547_v51, %v1499_v6 }
 0x1b8   : > { %v2352_v58 = vadd.f32 0.5, %v2240_v35  ;;  %v1400_v3 = vpop.f32.mrf.mxu2 }
 0x1b9   : > { %v3308_v49 = vpop.eup %3307  ;;  %v2031_v16 = vmul.f32 0.5, %v1548_v62  ;;  %v1401_v17 = vadd.f32 %v1400_v3, %v4281_v57  ;;  %v1449_v60 = vpop.f32.mrf.mxu3 }
 0x1ba   : > { %2465 = vst [vmem:[%s4165_s20 + $0x200] sm:$0xff] %v2352_v58  ;;  %v2248_v14 = vmul.f32 0.5, %v3308_v49 }
 0x1bb   : > { %3311 = vtanh.f32 %v2031_v16  ;;  %v1450_v4 = vadd.f32 %v1449_v60, %v1401_v17 }
 0x1bc   : > { %v2360_v19 = vadd.f32 0.5, %v2248_v14  ;;  %v1501_v20 = vpop.f32.mrf.mxu0 }
 0x1bd   : > { %v3310_v26 = vpop.eup %3309  ;;  %v2030_v7 = vmul.f32 0.5, %v1450_v4  ;;  %v1502_v15 = vadd.f32 %v1501_v20, %v4275_v28  ;;  %v1550_v18 = vpop.f32.mrf.mxu1  ;;  %1598 = vmatmul.bf16.gmra.mxu2 %v3953_v1 }
 0x1be   : > { %2473 = vst [vmem:[%s4165_s20 + $0x240] sm:$0xff] %v2360_v19  ;;  %v2247_v29 = vmul.f32 0.5, %v3310_v26  ;;  %1647 = vmatmul.bf16.gmra.mxu3 %v3956_v8 }
 0x1bf   : > { %3313 = vtanh.f32 %v2030_v7  ;;  %v1551_v32 = vadd.f32 %v1550_v18, %v1502_v15  ;;  %1696 = vmatmul.bf16.gmra.mxu0 %v3953_v1 }
 0x1c0   : > { %v2359_v40 = vadd.f32 0.5, %v2247_v29  ;;  %1745 = vmatmul.bf16.gmra.mxu1 %v3956_v8  ;;  %v1403_v41 = vpop.f32.mrf.mxu2 }
 0x1c1   : > { %v3312_v42 = vpop.eup %3311  ;;  %v2038_v45 = vmul.f32 0.5, %v1551_v32  ;;  %v1404_v44 = vadd.f32 %v1403_v41, %v4281_v57  ;;  %v1452_v46 = vpop.f32.mrf.mxu3 }
 0x1c2   : > { %2472 = vst [vmem:[%s4165_s20 + $0x238] sm:$0xff] %v2359_v40  ;;  %v2255_v47 = vmul.f32 0.5, %v3312_v42 }
 0x1c3   : > { %3315 = vtanh.f32 %v2038_v45  ;;  %v1453_v48 = vadd.f32 %v1452_v46, %v1404_v44 }
 0x1c4   : > { %v2367_v6 = vadd.f32 0.5, %v2255_v47  ;;  %v1503_v51 = vpop.f32.mrf.mxu0 }
 0x1c5   : > { %v3314_v35 = vpop.eup %3313  ;;  %v2037_v61 = vmul.f32 0.5, %v1453_v48  ;;  %v1504_v59 = vadd.f32 %v1503_v51, %v4275_v28  ;;  %v1552_v62 = vpop.f32.mrf.mxu1 }
 0x1c6   : > { %2480 = vst [vmem:[%s4165_s20 + $0x278] sm:$0xff] %v2367_v6  ;;  %v2254_v2 = vmul.f32 0.5, %v3314_v35  ;;  %v4547_v6 = vld [vmem:[%s4749_s4] sm:$0x7f] }
 0x1c7   : > { %3317 = vtanh.f32 %v2037_v61  ;;  %v1553_v36 = vadd.f32 %v1552_v62, %v1504_v59 }
 0x1c8   : > { %v2366_v0 = vadd.f32 0.5, %v2254_v2  ;;  %v1405_v58 = vpop.f32.mrf.mxu2 }
 0x1c9   : > { %v3316_v3 = vpop.eup %3315  ;;  %v2045_v9 = vmul.f32 0.5, %v1553_v36  ;;  %v1406_v49 = vadd.f32 %v1405_v58, %v4281_v57  ;;  %v1454_v16 = vpop.f32.mrf.mxu3 }
 0x1ca   : > { %2479 = vst [vmem:[%s4165_s20 + $0x270] sm:$0xff] %v2366_v0  ;;  %v2262_v17 = vmul.f32 0.5, %v3316_v3  ;;  %v4556_v0 = vperm.slane %v4547_v6, 3 }
 0x1cb   : > { %3319 = vtanh.f32 %v2045_v9  ;;  %v1455_v60 = vadd.f32 %v1454_v16, %v1406_v49 }
 0x1cc   : > { %v2374_v14 = vadd.f32 0.5, %v2262_v17  ;;  %v1506_v4 = vpop.f32.mrf.mxu0 }
 0x1cd   : > { %v3318_v19 = vpop.eup %3317  ;;  %v2044_v20 = vmul.f32 0.5, %v1455_v60  ;;  %v1507_v24 = vadd.f32 %v1506_v4, %v4275_v28  ;;  %v1555_v25 = vpop.f32.mrf.mxu1  ;;  %1603 = vmatmul.bf16.gmra.mxu2 %v3997_v50 }
 0x1ce   : > { %2487 = vst [vmem:[%s4165_s20 + $0x2b0] sm:$0xff] %v2374_v14  ;;  %v2261_v26 = vmul.f32 0.5, %v3318_v19  ;;  %1652 = vmatmul.bf16.gmra.mxu3 %v3999_v53 }
 0x1cf   : > { %3321 = vtanh.f32 %v2044_v20  ;;  %v1556_v7 = vadd.f32 %v1555_v25, %v1507_v24  ;;  %1701 = vmatmul.bf16.gmra.mxu0 %v3997_v50 }
 0x1d0   : > { %v2373_v15 = vadd.f32 0.5, %v2261_v26  ;;  %1750 = vmatmul.bf16.gmra.mxu1 %v3999_v53  ;;  %v1408_v18 = vpop.f32.mrf.mxu2 }
 0x1d1   : > { %v3320_v22 = vpop.eup %3319  ;;  %v2052_v27 = vmul.f32 0.5, %v1556_v7  ;;  %v1409_v5 = vadd.f32 %v1408_v18, %v4281_v57  ;;  %v1457_v29 = vpop.f32.mrf.mxu3 }
 0x1d2   : > { %2486 = vst [vmem:[%s4165_s20 + $0x2a8] sm:$0xff] %v2373_v15  ;;  %v2269_v31 = vmul.f32 0.5, %v3320_v22 }
 0x1d3   : > { %3323 = vtanh.f32 %v2052_v27  ;;  %v1458_v33 = vadd.f32 %v1457_v29, %v1409_v5 }
 0x1d4   : > { %v2381_v13 = vadd.f32 0.5, %v2269_v31  ;;  %v1508_v32 = vpop.f32.mrf.mxu0 }
 0x1d5   : > { %v3322_v34 = vpop.eup %3321  ;;  %v2051_v37 = vmul.f32 0.5, %v1458_v33  ;;  %v1509_v39 = vadd.f32 %v1508_v32, %v4275_v28  ;;  %v1557_v40 = vpop.f32.mrf.mxu1  ;;  %v4550_v28 = vperm.slane %v4547_v6, 4 }
 0x1d6   : > { %2494 = vst [vmem:[%s4165_s20 + $0x2e8] sm:$0xff] %v2381_v13  ;;  %v2268_v41 = vmul.f32 0.5, %v3322_v34 }
 0x1d7   : > { %3325 = vtanh.f32 %v2051_v37  ;;  %v1558_v11 = vadd.f32 %v1557_v40, %v1509_v39 }
 0x1d8   : > { %v2380_v42 = vadd.f32 0.5, %v2268_v41  ;;  %v1410_v45 = vpop.f32.mrf.mxu2 }
 0x1d9   : > { %v3324_v44 = vpop.eup %3323  ;;  %v2059_v46 = vmul.f32 0.5, %v1558_v11  ;;  %v1411_v47 = vadd.f32 %v1410_v45, %v4281_v57  ;;  %v1459_v48 = vpop.f32.mrf.mxu3 }
 0x1da   : > { %2493 = vst [vmem:[%s4165_s20 + $0x2e0] sm:$0xff] %v2380_v42  ;;  %v2276_v51 = vmul.f32 0.5, %v3324_v44 }
 0x1db   : > { %3327 = vtanh.f32 %v2059_v46  ;;  %v1460_v35 = vadd.f32 %v1459_v48, %v1411_v47 }
 0x1dc   : > { %v2388_v61 = vadd.f32 0.5, %v2276_v51  ;;  %v1667_v59 = vpop.f32.mrf.mxu0 }
 0x1dd   : > { %v3326_v62 = vpop.eup %3325  ;;  %v2058_v2 = vmul.f32 0.5, %v1460_v35  ;;  %v1668_v57 = vadd.f32 %v1667_v59, %v4550_v28  ;;  %v1716_v36 = vpop.f32.mrf.mxu1  ;;  %1764 = vmatmul.bf16.vlgmr.msrb.gmra.mxu2 %v3718_v63 }
 0x1de   : > { %2501 = vst [vmem:[%s4165_s20 + $0x320] sm:$0xff] %v2388_v61  ;;  %v2275_v58 = vmul.f32 0.5, %v3326_v62  ;;  %1813 = vmatmul.bf16.vlgmr.msrb.gmra.mxu3 %v3731_v10 }
 0x1df   : > { %3329 = vtanh.f32 %v2058_v2  ;;  %v1717_v3 = vadd.f32 %v1716_v36, %v1668_v57  ;;  %1862 = vmatmul.bf16.vlgmr.msrb.gmra.mxu0 %v3718_v63 }
 0x1e0   : > { %v2387_v9 = vadd.f32 0.5, %v2275_v58  ;;  %1911 = vmatmul.bf16.vlgmr.msrb.gmra.mxu1 %v3731_v10  ;;  %v1569_v49 = vpop.f32.mrf.mxu2 }
 0x1e1   : > { %v3328_v16 = vpop.eup %3327  ;;  %v1956_v17 = vmul.f32 0.5, %v1717_v3  ;;  %v1570_v60 = vadd.f32 %v1569_v49, %v4556_v0  ;;  %v1618_v14 = vpop.f32.mrf.mxu3 }
 0x1e2   : > { %2500 = vst [vmem:[%s4165_s20 + $0x318] sm:$0xff] %v2387_v9  ;;  %v2283_v4 = vmul.f32 0.5, %v3328_v16 }
 0x1e3   : > { %3331 = vtanh.f32 %v1956_v17  ;;  %v1619_v19 = vadd.f32 %v1618_v14, %v1570_v60 }
 0x1e4   : > { %v2395_v20 = vadd.f32 0.5, %v2283_v4  ;;  %v1669_v24 = vpop.f32.mrf.mxu0 }
 0x1e5   : > { %v3330_v25 = vpop.eup %3329  ;;  %v1955_v26 = vmul.f32 0.5, %v1619_v19  ;;  %v1670_v63 = vadd.f32 %v1669_v24, %v4550_v28  ;;  %v1718_v7 = vpop.f32.mrf.mxu1 }
 0x1e6   : > { %2508 = vst [vmem:[%s4165_s20 + $0x358] sm:$0xff] %v2395_v20  ;;  %v2282_v10 = vmul.f32 0.5, %v3330_v25 }
 0x1e7   : > { %3333 = vtanh.f32 %v1955_v26  ;;  %v1719_v15 = vadd.f32 %v1718_v7, %v1670_v63 }
 0x1e8   : > { %v2394_v18 = vadd.f32 0.5, %v2282_v10  ;;  %v1571_v22 = vpop.f32.mrf.mxu2 }
 0x1e9   : > { %v3332_v27 = vpop.eup %3331  ;;  %v1963_v5 = vmul.f32 0.5, %v1719_v15  ;;  %v1572_v29 = vadd.f32 %v1571_v22, %v4556_v0  ;;  %v1620_v31 = vpop.f32.mrf.mxu3 }
 0x1ea   : > { %2507 = vst [vmem:[%s4165_s20 + $0x350] sm:$0xff] %v2394_v18  ;;  %v2180_v33 = vmul.f32 0.5, %v3332_v27 }
 0x1eb   : > { %3335 = vtanh.f32 %v1963_v5  ;;  %v1621_v13 = vadd.f32 %v1620_v31, %v1572_v29 }
 0x1ec   : > { %v2292_v32 = vadd.f32 0.5, %v2180_v33  ;;  %v1672_v34 = vpop.f32.mrf.mxu0 }
 0x1ed   : > { %v3334_v37 = vpop.eup %3333  ;;  %v1962_v39 = vmul.f32 0.5, %v1621_v13  ;;  %v1673_v40 = vadd.f32 %v1672_v34, %v4550_v28  ;;  %v1721_v41 = vpop.f32.mrf.mxu1  ;;  %1769 = vmatmul.bf16.gmra.mxu2 %v3839_v30 }
 0x1ee   : > { %2404 = vst [vmem:[%s4165_s20 + $0x20] sm:$0xff] %v2292_v32  ;;  %v2179_v11 = vmul.f32 0.5, %v3334_v37  ;;  %1818 = vmatmul.bf16.gmra.mxu3 %v3849_v38 }
 0x1ef   : > { %3337 = vtanh.f32 %v1962_v39  ;;  %v1722_v42 = vadd.f32 %v1721_v41, %v1673_v40  ;;  %1867 = vmatmul.bf16.gmra.mxu0 %v3839_v30 }
 0x1f0   : > { %v2291_v45 = vadd.f32 0.5, %v2179_v11  ;;  %1916 = vmatmul.bf16.gmra.mxu1 %v3849_v38  ;;  %v1574_v44 = vpop.f32.mrf.mxu2 }
 0x1f1   : > { %v3336_v46 = vpop.eup %3335  ;;  %v1970_v47 = vmul.f32 0.5, %v1722_v42  ;;  %v1575_v48 = vadd.f32 %v1574_v44, %v4556_v0  ;;  %v1623_v51 = vpop.f32.mrf.mxu3 }
 0x1f2   : > { %2403 = vst [vmem:[%s4165_s20 + $0x18] sm:$0xff] %v2291_v45  ;;  %v2187_v35 = vmul.f32 0.5, %v3336_v46 }
 0x1f3   : > { %3339 = vtanh.f32 %v1970_v47  ;;  %v1624_v61 = vadd.f32 %v1623_v51, %v1575_v48 }
 0x1f4   : > { %v2299_v59 = vadd.f32 0.5, %v2187_v35  ;;  %v1674_v62 = vpop.f32.mrf.mxu0 }
 0x1f5   : > { %v3338_v2 = vpop.eup %3337  ;;  %v1969_v57 = vmul.f32 0.5, %v1624_v61  ;;  %v1675_v30 = vadd.f32 %v1674_v62, %v4550_v28  ;;  %v1723_v36 = vpop.f32.mrf.mxu1 }
 0x1f6   : > { %2412 = vst [vmem:[%s4165_s20 + $0x58] sm:$0xff] %v2299_v59  ;;  %v2186_v38 = vmul.f32 0.5, %v3338_v2 }
 0x1f7   : > { %3341 = vtanh.f32 %v1969_v57  ;;  %v1724_v58 = vadd.f32 %v1723_v36, %v1675_v30 }
 0x1f8   : > { %v2298_v3 = vadd.f32 0.5, %v2186_v38  ;;  %v1576_v9 = vpop.f32.mrf.mxu2 }
 0x1f9   : > { %v3340_v49 = vpop.eup %3339  ;;  %v1977_v16 = vmul.f32 0.5, %v1724_v58  ;;  %v1577_v17 = vadd.f32 %v1576_v9, %v4556_v0  ;;  %v1625_v60 = vpop.f32.mrf.mxu3 }
 0x1fa   : > { %2411 = vst [vmem:[%s4165_s20 + $0x50] sm:$0xff] %v2298_v3  ;;  %v2194_v14 = vmul.f32 0.5, %v3340_v49 }
 0x1fb   : > { %3343 = vtanh.f32 %v1977_v16  ;;  %v1626_v4 = vadd.f32 %v1625_v60, %v1577_v17 }
 0x1fc   : > { %v2306_v19 = vadd.f32 0.5, %v2194_v14  ;;  %v1677_v20 = vpop.f32.mrf.mxu0 }
 0x1fd   : > { %v3342_v24 = vpop.eup %3341  ;;  %v1976_v25 = vmul.f32 0.5, %v1626_v4  ;;  %v1678_v26 = vadd.f32 %v1677_v20, %v4550_v28  ;;  %v1726_v63 = vpop.f32.mrf.mxu1  ;;  %1774 = vmatmul.bf16.gmra.mxu2 %v3964_v43 }
 0x1fe   : > { %2419 = vst [vmem:[%s4165_s20 + $0x90] sm:$0xff] %v2306_v19  ;;  %v2193_v7 = vmul.f32 0.5, %v3342_v24  ;;  %1823 = vmatmul.bf16.gmra.mxu3 %v3968_v12 }
 0x1ff   : > { %3345 = vtanh.f32 %v1976_v25  ;;  %v1727_v10 = vadd.f32 %v1726_v63, %v1678_v26  ;;  %1872 = vmatmul.bf16.gmra.mxu0 %v3964_v43 }
 0x200   : > { %v2305_v15 = vadd.f32 0.5, %v2193_v7  ;;  %1921 = vmatmul.bf16.gmra.mxu1 %v3968_v12  ;;  %v1579_v18 = vpop.f32.mrf.mxu2 }
 0x201   : > { %v3344_v22 = vpop.eup %3343  ;;  %v1984_v27 = vmul.f32 0.5, %v1727_v10  ;;  %v1580_v5 = vadd.f32 %v1579_v18, %v4556_v0  ;;  %v1628_v29 = vpop.f32.mrf.mxu3 }
 0x202   : > { %2418 = vst [vmem:[%s4165_s20 + $0x88] sm:$0xff] %v2305_v15  ;;  %v2201_v31 = vmul.f32 0.5, %v3344_v22 }
 0x203   : > { %3347 = vtanh.f32 %v1984_v27  ;;  %v1629_v33 = vadd.f32 %v1628_v29, %v1580_v5 }
 0x204   : > { %v2313_v13 = vadd.f32 0.5, %v2201_v31  ;;  %v1679_v32 = vpop.f32.mrf.mxu0 }
 0x205   : > { %v3346_v34 = vpop.eup %3345  ;;  %v1983_v37 = vmul.f32 0.5, %v1629_v33  ;;  %v1680_v43 = vadd.f32 %v1679_v32, %v4550_v28  ;;  %v1728_v39 = vpop.f32.mrf.mxu1 }
 0x206   : > { %2426 = vst [vmem:[%s4165_s20 + $0xc8] sm:$0xff] %v2313_v13  ;;  %v2200_v12 = vmul.f32 0.5, %v3346_v34 }
 0x207   : > { %3349 = vtanh.f32 %v1983_v37  ;;  %v1729_v40 = vadd.f32 %v1728_v39, %v1680_v43 }
 0x208   : > { %v2312_v41 = vadd.f32 0.5, %v2200_v12  ;;  %v1581_v11 = vpop.f32.mrf.mxu2 }
 0x209   : > { %v3348_v42 = vpop.eup %3347  ;;  %v1991_v45 = vmul.f32 0.5, %v1729_v40  ;;  %v1582_v44 = vadd.f32 %v1581_v11, %v4556_v0  ;;  %v1630_v46 = vpop.f32.mrf.mxu3 }
 0x20a   : > { %2425 = vst [vmem:[%s4165_s20 + $0xc0] sm:$0xff] %v2312_v41  ;;  %v2208_v47 = vmul.f32 0.5, %v3348_v42 }
 0x20b   : > { %3351 = vtanh.f32 %v1991_v45  ;;  %v1631_v48 = vadd.f32 %v1630_v46, %v1582_v44 }
 0x20c   : > { %v2320_v51 = vadd.f32 0.5, %v2208_v47  ;;  %v1682_v35 = vpop.f32.mrf.mxu0 }
 0x20d   : > { %v3350_v61 = vpop.eup %3349  ;;  %v1990_v59 = vmul.f32 0.5, %v1631_v48  ;;  %v1683_v62 = vadd.f32 %v1682_v35, %v4550_v28  ;;  %v1731_v2 = vpop.f32.mrf.mxu1  ;;  %1779 = vmatmul.bf16.gmra.mxu2 %v4001_v54 }
 0x20e   : > { %2433 = vst [vmem:[%s4165_s20 + $0x100] sm:$0xff] %v2320_v51  ;;  %v2207_v57 = vmul.f32 0.5, %v3350_v61  ;;  %1828 = vmatmul.bf16.gmra.mxu3 %v4004_v56 }
 0x20f   : > { %3353 = vtanh.f32 %v1990_v59  ;;  %v1732_v30 = vadd.f32 %v1731_v2, %v1683_v62  ;;  %1877 = vmatmul.bf16.gmra.mxu0 %v4001_v54 }
 0x210   : > { %v2319_v36 = vadd.f32 0.5, %v2207_v57  ;;  %1926 = vmatmul.bf16.gmra.mxu1 %v4004_v56  ;;  %v1584_v38 = vpop.f32.mrf.mxu2 }
 0x211   : > { %v3352_v58 = vpop.eup %3351  ;;  %v1998_v3 = vmul.f32 0.5, %v1732_v30  ;;  %v1585_v9 = vadd.f32 %v1584_v38, %v4556_v0  ;;  %v1633_v49 = vpop.f32.mrf.mxu3 }
 0x212   : > { %2432 = vst [vmem:[%s4165_s20 + $0xf8] sm:$0xff] %v2319_v36  ;;  %v2215_v16 = vmul.f32 0.5, %v3352_v58 }
 0x213   : > { %3355 = vtanh.f32 %v1998_v3  ;;  %v1634_v17 = vadd.f32 %v1633_v49, %v1585_v9 }
 0x214   : > { %v2327_v60 = vadd.f32 0.5, %v2215_v16  ;;  %v1684_v14 = vpop.f32.mrf.mxu0 }
 0x215   : > { %v3354_v4 = vpop.eup %3353  ;;  %v1997_v19 = vmul.f32 0.5, %v1634_v17  ;;  %v1685_v54 = vadd.f32 %v1684_v14, %v4550_v28  ;;  %v1733_v20 = vpop.f32.mrf.mxu1 }
 0x216   : > { %2440 = vst [vmem:[%s4165_s20 + $0x138] sm:$0xff] %v2327_v60  ;;  %v2214_v56 = vmul.f32 0.5, %v3354_v4 }
 0x217   : > { %3357 = vtanh.f32 %v1997_v19  ;;  %v1734_v24 = vadd.f32 %v1733_v20, %v1685_v54 }
 0x218   : > { %v2326_v25 = vadd.f32 0.5, %v2214_v56  ;;  %v1586_v26 = vpop.f32.mrf.mxu2 }
 0x219   : > { %v3356_v63 = vpop.eup %3355  ;;  %v2005_v7 = vmul.f32 0.5, %v1734_v24  ;;  %v1587_v10 = vadd.f32 %v1586_v26, %v4556_v0  ;;  %v1635_v15 = vpop.f32.mrf.mxu3 }
 0x21a   : > { %2439 = vst [vmem:[%s4165_s20 + $0x130] sm:$0xff] %v2326_v25  ;;  %v2222_v18 = vmul.f32 0.5, %v3356_v63 }
 0x21b   : > { %3359 = vtanh.f32 %v2005_v7  ;;  %v1636_v22 = vadd.f32 %v1635_v15, %v1587_v10 }
 0x21c   : > { %v2334_v27 = vadd.f32 0.5, %v2222_v18  ;;  %v1687_v5 = vpop.f32.mrf.mxu0 }
 0x21d   : > { %v3358_v29 = vpop.eup %3357  ;;  %v2004_v31 = vmul.f32 0.5, %v1636_v22  ;;  %v1688_v33 = vadd.f32 %v1687_v5, %v4550_v28  ;;  %v1736_v13 = vpop.f32.mrf.mxu1  ;;  %1784 = vmatmul.bf16.gmra.mxu2 %v3707_v52 }
 0x21e   : > { %2447 = vst [vmem:[%s4165_s20 + $0x170] sm:$0xff] %v2334_v27  ;;  %v2221_v32 = vmul.f32 0.5, %v3358_v29  ;;  %1833 = vmatmul.bf16.gmra.mxu3 %v3709_v55 }
 0x21f   : > { %3361 = vtanh.f32 %v2004_v31  ;;  %v1737_v34 = vadd.f32 %v1736_v13, %v1688_v33  ;;  %1882 = vmatmul.bf16.gmra.mxu0 %v3707_v52 }
 0x220   : > { %v2333_v37 = vadd.f32 0.5, %v2221_v32  ;;  %1931 = vmatmul.bf16.gmra.mxu1 %v3709_v55  ;;  %v1589_v43 = vpop.f32.mrf.mxu2 }
 0x221   : > { %v3360_v39 = vpop.eup %3359  ;;  %v2012_v12 = vmul.f32 0.5, %v1737_v34  ;;  %v1590_v40 = vadd.f32 %v1589_v43, %v4556_v0  ;;  %v1638_v41 = vpop.f32.mrf.mxu3 }
 0x222   : > { %2446 = vst [vmem:[%s4165_s20 + $0x168] sm:$0xff] %v2333_v37  ;;  %v2229_v11 = vmul.f32 0.5, %v3360_v39 }
 0x223   : > { %3363 = vtanh.f32 %v2012_v12  ;;  %v1639_v42 = vadd.f32 %v1638_v41, %v1590_v40 }
 0x224   : > { %v2341_v45 = vadd.f32 0.5, %v2229_v11  ;;  %v1689_v44 = vpop.f32.mrf.mxu0 }
 0x225   : > { %v3362_v46 = vpop.eup %3361  ;;  %v2011_v47 = vmul.f32 0.5, %v1639_v42  ;;  %v1690_v52 = vadd.f32 %v1689_v44, %v4550_v28  ;;  %v1738_v48 = vpop.f32.mrf.mxu1 }
 0x226   : > { %2454 = vst [vmem:[%s4165_s20 + $0x1a8] sm:$0xff] %v2341_v45  ;;  %v2228_v55 = vmul.f32 0.5, %v3362_v46 }
 0x227   : > { %3365 = vtanh.f32 %v2011_v47  ;;  %v1739_v51 = vadd.f32 %v1738_v48, %v1690_v52 }
 0x228   : > { %v2340_v35 = vadd.f32 0.5, %v2228_v55  ;;  %v1591_v61 = vpop.f32.mrf.mxu2 }
 0x229   : > { %v3364_v59 = vpop.eup %3363  ;;  %v2019_v62 = vmul.f32 0.5, %v1739_v51  ;;  %v1592_v2 = vadd.f32 %v1591_v61, %v4556_v0  ;;  %v1640_v57 = vpop.f32.mrf.mxu3 }
 0x22a   : > { %2453 = vst [vmem:[%s4165_s20 + $0x1a0] sm:$0xff] %v2340_v35  ;;  %v2236_v30 = vmul.f32 0.5, %v3364_v59 }
 0x22b   : > { %3367 = vtanh.f32 %v2019_v62  ;;  %v1641_v36 = vadd.f32 %v1640_v57, %v1592_v2 }
 0x22c   : > { %v2348_v38 = vadd.f32 0.5, %v2236_v30  ;;  %v1692_v58 = vpop.f32.mrf.mxu0 }
 0x22d   : > { %v3366_v3 = vpop.eup %3365  ;;  %v2018_v9 = vmul.f32 0.5, %v1641_v36  ;;  %v1693_v49 = vadd.f32 %v1692_v58, %v4550_v28  ;;  %v1741_v16 = vpop.f32.mrf.mxu1  ;;  %1789 = vmatmul.bf16.gmra.mxu2 %v3816_v21 }
 0x22e   : > { %2461 = vst [vmem:[%s4165_s20 + $0x1e0] sm:$0xff] %v2348_v38  ;;  %v2235_v17 = vmul.f32 0.5, %v3366_v3  ;;  %1838 = vmatmul.bf16.gmra.mxu3 %v3819_v23 }
 0x22f   : > { %3369 = vtanh.f32 %v2018_v9  ;;  %v1742_v60 = vadd.f32 %v1741_v16, %v1693_v49  ;;  %1887 = vmatmul.bf16.gmra.mxu0 %v3816_v21 }
 0x230   : > { %v2347_v14 = vadd.f32 0.5, %v2235_v17  ;;  %1936 = vmatmul.bf16.gmra.mxu1 %v3819_v23  ;;  %v1594_v4 = vpop.f32.mrf.mxu2 }
 0x231   : > { %v3368_v19 = vpop.eup %3367  ;;  %v2026_v54 = vmul.f32 0.5, %v1742_v60  ;;  %v1595_v20 = vadd.f32 %v1594_v4, %v4556_v0  ;;  %v1643_v56 = vpop.f32.mrf.mxu3 }
 0x232   : > { %2460 = vst [vmem:[%s4165_s20 + $0x1d8] sm:$0xff] %v2347_v14  ;;  %v2243_v24 = vmul.f32 0.5, %v3368_v19 }
 0x233   : > { %3371 = vtanh.f32 %v2026_v54  ;;  %v1644_v25 = vadd.f32 %v1643_v56, %v1595_v20 }
 0x234   : > { %v2355_v26 = vadd.f32 0.5, %v2243_v24  ;;  %v1694_v63 = vpop.f32.mrf.mxu0 }
 0x235   : > { %v3370_v7 = vpop.eup %3369  ;;  %v2025_v10 = vmul.f32 0.5, %v1644_v25  ;;  %v1695_v21 = vadd.f32 %v1694_v63, %v4550_v28  ;;  %v1743_v15 = vpop.f32.mrf.mxu1 }
 0x236   : > { %2468 = vst [vmem:[%s4165_s20 + $0x218] sm:$0xff] %v2355_v26  ;;  %v2242_v23 = vmul.f32 0.5, %v3370_v7 }
 0x237   : > { %3373 = vtanh.f32 %v2025_v10  ;;  %v1744_v18 = vadd.f32 %v1743_v15, %v1695_v21 }
 0x238   : > { %v2354_v22 = vadd.f32 0.5, %v2242_v23  ;;  %v1596_v27 = vpop.f32.mrf.mxu2 }
 0x239   : > { %v3372_v5 = vpop.eup %3371  ;;  %v2033_v29 = vmul.f32 0.5, %v1744_v18  ;;  %v1597_v31 = vadd.f32 %v1596_v27, %v4556_v0  ;;  %v1645_v33 = vpop.f32.mrf.mxu3 }
 0x23a   : > { %2467 = vst [vmem:[%s4165_s20 + $0x210] sm:$0xff] %v2354_v22  ;;  %v2250_v13 = vmul.f32 0.5, %v3372_v5 }
 0x23b   : > { %3375 = vtanh.f32 %v2033_v29  ;;  %v1646_v32 = vadd.f32 %v1645_v33, %v1597_v31 }
 0x23c   : > { %v2362_v34 = vadd.f32 0.5, %v2250_v13  ;;  %v1697_v37 = vpop.f32.mrf.mxu0 }
 0x23d   : > { %v3374_v43 = vpop.eup %3373  ;;  %v2032_v39 = vmul.f32 0.5, %v1646_v32  ;;  %v1698_v12 = vadd.f32 %v1697_v37, %v4550_v28  ;;  %v1746_v40 = vpop.f32.mrf.mxu1  ;;  %1794 = vmatmul.bf16.gmra.mxu2 %v3953_v1  ;;  %v4652_v37 = vperm.slane %v4547_v6, 6 }
 0x23e   : > { %2475 = vst [vmem:[%s4165_s20 + $0x250] sm:$0xff] %v2362_v34  ;;  %v2249_v41 = vmul.f32 0.5, %v3374_v43  ;;  %1843 = vmatmul.bf16.gmra.mxu3 %v3956_v8 }
 0x23f   : > { %3377 = vtanh.f32 %v2032_v39  ;;  %v1747_v11 = vadd.f32 %v1746_v40, %v1698_v12  ;;  %1892 = vmatmul.bf16.gmra.mxu0 %v3953_v1 }
 0x240   : > { %v2361_v42 = vadd.f32 0.5, %v2249_v41  ;;  %1941 = vmatmul.bf16.gmra.mxu1 %v3956_v8  ;;  %v1599_v45 = vpop.f32.mrf.mxu2 }
 0x241   : > { %v3376_v44 = vpop.eup %3375  ;;  %v2040_v46 = vmul.f32 0.5, %v1747_v11  ;;  %v1600_v47 = vadd.f32 %v1599_v45, %v4556_v0  ;;  %v1648_v52 = vpop.f32.mrf.mxu3  ;;  %v4657_v45 = vperm.slane %v4547_v6, 5 }
 0x242   : > { %2474 = vst [vmem:[%s4165_s20 + $0x248] sm:$0xff] %v2361_v42  ;;  %v2257_v48 = vmul.f32 0.5, %v3376_v44 }
 0x243   : > { %3379 = vtanh.f32 %v2040_v46  ;;  %v1649_v55 = vadd.f32 %v1648_v52, %v1600_v47 }
 0x244   : > { %v2369_v51 = vadd.f32 0.5, %v2257_v48  ;;  %v1699_v35 = vpop.f32.mrf.mxu0 }
 0x245   : > { %v3378_v61 = vpop.eup %3377  ;;  %v2039_v59 = vmul.f32 0.5, %v1649_v55  ;;  %v1700_v1 = vadd.f32 %v1699_v35, %v4550_v28  ;;  %v1748_v62 = vpop.f32.mrf.mxu1 }
 0x246   : > { %2482 = vst [vmem:[%s4165_s20 + $0x288] sm:$0xff] %v2369_v51  ;;  %v2256_v8 = vmul.f32 0.5, %v3378_v61 }
 0x247   : > { %3381 = vtanh.f32 %v2039_v59  ;;  %v1749_v2 = vadd.f32 %v1748_v62, %v1700_v1 }
 0x248   : > { %v2368_v57 = vadd.f32 0.5, %v2256_v8  ;;  %v1601_v30 = vpop.f32.mrf.mxu2 }
 0x249   : > { %v3380_v36 = vpop.eup %3379  ;;  %v2047_v38 = vmul.f32 0.5, %v1749_v2  ;;  %v1602_v58 = vadd.f32 %v1601_v30, %v4556_v0  ;;  %v1650_v3 = vpop.f32.mrf.mxu3 }
 0x24a   : > { %2481 = vst [vmem:[%s4165_s20 + $0x280] sm:$0xff] %v2368_v57  ;;  %v2264_v9 = vmul.f32 0.5, %v3380_v36 }
 0x24b   : > { %3383 = vtanh.f32 %v2047_v38  ;;  %v1651_v49 = vadd.f32 %v1650_v3, %v1602_v58 }
 0x24c   : > { %v2376_v16 = vadd.f32 0.5, %v2264_v9  ;;  %v1702_v17 = vpop.f32.mrf.mxu0 }
 0x24d   : > { %v3382_v60 = vpop.eup %3381  ;;  %v2046_v14 = vmul.f32 0.5, %v1651_v49  ;;  %v1703_v4 = vadd.f32 %v1702_v17, %v4550_v28  ;;  %v1751_v19 = vpop.f32.mrf.mxu1  ;;  %1799 = vmatmul.bf16.gmra.mxu2 %v3997_v50 }
 0x24e   : > { %2489 = vst [vmem:[%s4165_s20 + $0x2c0] sm:$0xff] %v2376_v16  ;;  %v2263_v54 = vmul.f32 0.5, %v3382_v60  ;;  %1848 = vmatmul.bf16.gmra.mxu3 %v3999_v53 }
 0x24f   : > { %3385 = vtanh.f32 %v2046_v14  ;;  %v1752_v20 = vadd.f32 %v1751_v19, %v1703_v4  ;;  %1897 = vmatmul.bf16.gmra.mxu0 %v3997_v50 }
 0x250   : > { %v2375_v56 = vadd.f32 0.5, %v2263_v54  ;;  %1946 = vmatmul.bf16.gmra.mxu1 %v3999_v53  ;;  %v1604_v24 = vpop.f32.mrf.mxu2 }
 0x251   : > { %v3384_v25 = vpop.eup %3383  ;;  %v2054_v26 = vmul.f32 0.5, %v1752_v20  ;;  %v1605_v63 = vadd.f32 %v1604_v24, %v4556_v0  ;;  %v1653_v7 = vpop.f32.mrf.mxu3 }
 0x252   : > { %2488 = vst [vmem:[%s4165_s20 + $0x2b8] sm:$0xff] %v2375_v56  ;;  %v2271_v10 = vmul.f32 0.5, %v3384_v25 }
 0x253   : > { %3387 = vtanh.f32 %v2054_v26  ;;  %v1654_v21 = vadd.f32 %v1653_v7, %v1605_v63 }
 0x254   : > { %v2383_v15 = vadd.f32 0.5, %v2271_v10  ;;  %v1704_v23 = vpop.f32.mrf.mxu0 }
 0x255   : > { %v3386_v18 = vpop.eup %3385  ;;  %v2053_v22 = vmul.f32 0.5, %v1654_v21  ;;  %v1705_v50 = vadd.f32 %v1704_v23, %v4550_v28  ;;  %v1753_v27 = vpop.f32.mrf.mxu1 }
 0x256   : > { %2496 = vst [vmem:[%s4165_s20 + $0x2f8] sm:$0xff] %v2383_v15  ;;  %v2270_v53 = vmul.f32 0.5, %v3386_v18 }
 0x257   : > { %3389 = vtanh.f32 %v2053_v22  ;;  %v1754_v5 = vadd.f32 %v1753_v27, %v1705_v50 }
 0x258   : > { %v2382_v29 = vadd.f32 0.5, %v2270_v53  ;;  %v1606_v31 = vpop.f32.mrf.mxu2 }
 0x259   : > { %v3388_v33 = vpop.eup %3387  ;;  %v2061_v13 = vmul.f32 0.5, %v1754_v5  ;;  %v1607_v32 = vadd.f32 %v1606_v31, %v4556_v0  ;;  %v1655_v34 = vpop.f32.mrf.mxu3 }
 0x25a   : > { %2495 = vst [vmem:[%s4165_s20 + $0x2f0] sm:$0xff] %v2382_v29  ;;  %v2278_v43 = vmul.f32 0.5, %v3388_v33 }
 0x25b   : > { %3391 = vtanh.f32 %v2061_v13  ;;  %v1656_v28 = vadd.f32 %v1655_v34, %v1607_v32 }
 0x25c   : > { %v2390_v39 = vadd.f32 0.5, %v2278_v43  ;;  %v1863_v12 = vpop.f32.mrf.mxu0 }
 0x25d   : > { %v3390_v40 = vpop.eup %3389  ;;  %v2060_v41 = vmul.f32 0.5, %v1656_v28  ;;  %v1864_v11 = vadd.f32 %v1863_v12, %v4652_v37  ;;  %v1912_v42 = vpop.f32.mrf.mxu1 }
 0x25e   : > { %2503 = vst [vmem:[%s4165_s20 + $0x330] sm:$0xff] %v2390_v39  ;;  %v2277_v0 = vmul.f32 0.5, %v3390_v40 }
 0x25f   : > { %3393 = vtanh.f32 %v2060_v41  ;;  %v1913_v44 = vadd.f32 %v1912_v42, %v1864_v11 }
 0x260   : > { %v2389_v46 = vadd.f32 0.5, %v2277_v0  ;;  %v1765_v47 = vpop.f32.mrf.mxu2 }
 0x261   : > { %v3392_v52 = vpop.eup %3391  ;;  %v1958_v48 = vmul.f32 0.5, %v1913_v44  ;;  %v1766_v55 = vadd.f32 %v1765_v47, %v4657_v45  ;;  %v1814_v51 = vpop.f32.mrf.mxu3 }
 0x262   : > { %2502 = vst [vmem:[%s4165_s20 + $0x328] sm:$0xff] %v2389_v46  ;;  %v2285_v35 = vmul.f32 0.5, %v3392_v52 }
 0x263   : > { %3395 = vtanh.f32 %v1958_v48  ;;  %v1815_v61 = vadd.f32 %v1814_v51, %v1766_v55 }
 0x264   : > { %v2397_v59 = vadd.f32 0.5, %v2285_v35  ;;  %v1865_v6 = vpop.f32.mrf.mxu0 }
 0x265   : > { %v3394_v1 = vpop.eup %3393  ;;  %v1957_v62 = vmul.f32 0.5, %v1815_v61  ;;  %v1866_v8 = vadd.f32 %v1865_v6, %v4652_v37  ;;  %v1914_v2 = vpop.f32.mrf.mxu1 }
 0x266   : > { %2510 = vst [vmem:[%s4165_s20 + $0x368] sm:$0xff] %v2397_v59  ;;  %v2284_v57 = vmul.f32 0.5, %v3394_v1 }
 0x267   : > { %3397 = vtanh.f32 %v1957_v62  ;;  %v1915_v30 = vadd.f32 %v1914_v2, %v1866_v8 }
 0x268   : > { %v2396_v36 = vadd.f32 0.5, %v2284_v57  ;;  %v1767_v38 = vpop.f32.mrf.mxu2 }
 0x269   : > { %v3396_v58 = vpop.eup %3395  ;;  %v1965_v3 = vmul.f32 0.5, %v1915_v30  ;;  %v1768_v9 = vadd.f32 %v1767_v38, %v4657_v45  ;;  %v1816_v49 = vpop.f32.mrf.mxu3 }
 0x26a   : > { %2509 = vst [vmem:[%s4165_s20 + $0x360] sm:$0xff] %v2396_v36  ;;  %v2182_v16 = vmul.f32 0.5, %v3396_v58 }
 0x26b   : > { %3399 = vtanh.f32 %v1965_v3  ;;  %v1817_v17 = vadd.f32 %v1816_v49, %v1768_v9 }
 0x26c   : > { %v2294_v60 = vadd.f32 0.5, %v2182_v16  ;;  %v1868_v14 = vpop.f32.mrf.mxu0 }
 0x26d   : > { %v3398_v4 = vpop.eup %3397  ;;  %v1964_v19 = vmul.f32 0.5, %v1817_v17  ;;  %v1869_v54 = vadd.f32 %v1868_v14, %v4652_v37  ;;  %v1917_v20 = vpop.f32.mrf.mxu1 }
 0x26e   : > { %2407 = vst.msk [vmem:[%s4165_s20 + $0x30] sm:$0xff] %vm2406_vm0, %v2294_v60  ;;  %v2181_v56 = vmul.f32 0.5, %v3398_v4 }
 0x26f   : > { %3401 = vtanh.f32 %v1964_v19  ;;  %v1918_v24 = vadd.f32 %v1917_v20, %v1869_v54 }
 0x270   : > { %v2293_v25 = vadd.f32 0.5, %v2181_v56  ;;  %v1770_v26 = vpop.f32.mrf.mxu2 }
 0x271   : > { %v3400_v63 = vpop.eup %3399  ;;  %v1972_v7 = vmul.f32 0.5, %v1918_v24  ;;  %v1771_v10 = vadd.f32 %v1770_v26, %v4657_v45  ;;  %v1819_v21 = vpop.f32.mrf.mxu3 }
 0x272   : > { %2405 = vst [vmem:[%s4165_s20 + $0x28] sm:$0xff] %v2293_v25  ;;  %v2189_v15 = vmul.f32 0.5, %v3400_v63 }
 0x273   : > { %3403 = vtanh.f32 %v1972_v7  ;;  %v1820_v23 = vadd.f32 %v1819_v21, %v1771_v10 }
 0x274   : > { %v2301_v18 = vadd.f32 0.5, %v2189_v15  ;;  %v1870_v22 = vpop.f32.mrf.mxu0 }
 0x275   : > { %v3402_v50 = vpop.eup %3401  ;;  %v1971_v27 = vmul.f32 0.5, %v1820_v23  ;;  %v1871_v53 = vadd.f32 %v1870_v22, %v4652_v37  ;;  %v1919_v5 = vpop.f32.mrf.mxu1 }
 0x276   : > { %2414 = vst.msk [vmem:[%s4165_s20 + $0x68] sm:$0xff] %vm2406_vm0, %v2301_v18  ;;  %v2188_v29 = vmul.f32 0.5, %v3402_v50 }
 0x277   : > { %3405 = vtanh.f32 %v1971_v27  ;;  %v1920_v31 = vadd.f32 %v1919_v5, %v1871_v53 }
 0x278   : > { %v2300_v33 = vadd.f32 0.5, %v2188_v29  ;;  %v1772_v13 = vpop.f32.mrf.mxu2 }
 0x279   : > { %v3404_v32 = vpop.eup %3403  ;;  %v1979_v34 = vmul.f32 0.5, %v1920_v31  ;;  %v1773_v43 = vadd.f32 %v1772_v13, %v4657_v45  ;;  %v1821_v28 = vpop.f32.mrf.mxu3 }
 0x27a   : > { %2413 = vst [vmem:[%s4165_s20 + $0x60] sm:$0xff] %v2300_v33  ;;  %v2196_v39 = vmul.f32 0.5, %v3404_v32 }
 0x27b   : > { %3407 = vtanh.f32 %v1979_v34  ;;  %v1822_v12 = vadd.f32 %v1821_v28, %v1773_v43 }
 0x27c   : > { %v2308_v40 = vadd.f32 0.5, %v2196_v39  ;;  %v1873_v41 = vpop.f32.mrf.mxu0 }
 0x27d   : > { %v3406_v11 = vpop.eup %3405  ;;  %v1978_v42 = vmul.f32 0.5, %v1822_v12  ;;  %v1874_v0 = vadd.f32 %v1873_v41, %v4652_v37  ;;  %v1922_v44 = vpop.f32.mrf.mxu1 }
 0x27e   : > { %2421 = vst.msk [vmem:[%s4165_s20 + $0xa0] sm:$0xff] %vm2406_vm0, %v2308_v40  ;;  %v2195_v46 = vmul.f32 0.5, %v3406_v11 }
 0x27f   : > { %3409 = vtanh.f32 %v1978_v42  ;;  %v1923_v47 = vadd.f32 %v1922_v44, %v1874_v0 }
 0x280   : > { %v2307_v52 = vadd.f32 0.5, %v2195_v46  ;;  %v1775_v48 = vpop.f32.mrf.mxu2 }
 0x281   : > { %v3408_v55 = vpop.eup %3407  ;;  %v1986_v51 = vmul.f32 0.5, %v1923_v47  ;;  %v1776_v35 = vadd.f32 %v1775_v48, %v4657_v45  ;;  %v1824_v61 = vpop.f32.mrf.mxu3 }
 0x282   : > { %2420 = vst [vmem:[%s4165_s20 + $0x98] sm:$0xff] %v2307_v52  ;;  %v2203_v59 = vmul.f32 0.5, %v3408_v55 }
 0x283   : > { %3411 = vtanh.f32 %v1986_v51  ;;  %v1825_v6 = vadd.f32 %v1824_v61, %v1776_v35 }
 0x284   : > { %v2315_v1 = vadd.f32 0.5, %v2203_v59  ;;  %v1875_v62 = vpop.f32.mrf.mxu0 }
 0x285   : > { %v3410_v8 = vpop.eup %3409  ;;  %v1985_v2 = vmul.f32 0.5, %v1825_v6  ;;  %v1876_v57 = vadd.f32 %v1875_v62, %v4652_v37  ;;  %v1924_v30 = vpop.f32.mrf.mxu1 }
 0x286   : > { %2428 = vst.msk [vmem:[%s4165_s20 + $0xd8] sm:$0xff] %vm2406_vm0, %v2315_v1  ;;  %v2202_v36 = vmul.f32 0.5, %v3410_v8 }
 0x287   : > { %3413 = vtanh.f32 %v1985_v2  ;;  %v1925_v38 = vadd.f32 %v1924_v30, %v1876_v57 }
 0x288   : > { %v2314_v58 = vadd.f32 0.5, %v2202_v36  ;;  %v1777_v3 = vpop.f32.mrf.mxu2 }
 0x289   : > { %v3412_v9 = vpop.eup %3411  ;;  %v1993_v49 = vmul.f32 0.5, %v1925_v38  ;;  %v1778_v16 = vadd.f32 %v1777_v3, %v4657_v45  ;;  %v1826_v17 = vpop.f32.mrf.mxu3 }
 0x28a   : > { %2427 = vst [vmem:[%s4165_s20 + $0xd0] sm:$0xff] %v2314_v58  ;;  %v2210_v60 = vmul.f32 0.5, %v3412_v9 }
 0x28b   : > { %3415 = vtanh.f32 %v1993_v49  ;;  %v1827_v14 = vadd.f32 %v1826_v17, %v1778_v16 }
 0x28c   : > { %v2322_v4 = vadd.f32 0.5, %v2210_v60  ;;  %v1878_v19 = vpop.f32.mrf.mxu0 }
 0x28d   : > { %v3414_v54 = vpop.eup %3413  ;;  %v1992_v20 = vmul.f32 0.5, %v1827_v14  ;;  %v1879_v56 = vadd.f32 %v1878_v19, %v4652_v37  ;;  %v1927_v24 = vpop.f32.mrf.mxu1 }
 0x28e   : > { %2435 = vst.msk [vmem:[%s4165_s20 + $0x110] sm:$0xff] %vm2406_vm0, %v2322_v4  ;;  %v2209_v25 = vmul.f32 0.5, %v3414_v54 }
 0x28f   : > { %3417 = vtanh.f32 %v1992_v20  ;;  %v1928_v26 = vadd.f32 %v1927_v24, %v1879_v56 }
 0x290   : > { %v2321_v63 = vadd.f32 0.5, %v2209_v25  ;;  %v1780_v7 = vpop.f32.mrf.mxu2 }
 0x291   : > { %v3416_v10 = vpop.eup %3415  ;;  %v2000_v21 = vmul.f32 0.5, %v1928_v26  ;;  %v1781_v15 = vadd.f32 %v1780_v7, %v4657_v45  ;;  %v1829_v23 = vpop.f32.mrf.mxu3 }
 0x292   : > { %2434 = vst [vmem:[%s4165_s20 + $0x108] sm:$0xff] %v2321_v63  ;;  %v2217_v18 = vmul.f32 0.5, %v3416_v10 }
 0x293   : > { %3419 = vtanh.f32 %v2000_v21  ;;  %v1830_v22 = vadd.f32 %v1829_v23, %v1781_v15 }
 0x294   : > { %v2329_v50 = vadd.f32 0.5, %v2217_v18  ;;  %v1880_v27 = vpop.f32.mrf.mxu0 }
 0x295   : > { %v3418_v53 = vpop.eup %3417  ;;  %v1999_v5 = vmul.f32 0.5, %v1830_v22  ;;  %v1881_v29 = vadd.f32 %v1880_v27, %v4652_v37  ;;  %v1929_v31 = vpop.f32.mrf.mxu1 }
 0x296   : > { %2442 = vst.msk [vmem:[%s4165_s20 + $0x148] sm:$0xff] %vm2406_vm0, %v2329_v50  ;;  %v2216_v33 = vmul.f32 0.5, %v3418_v53 }
 0x297   : > { %3421 = vtanh.f32 %v1999_v5  ;;  %v1930_v13 = vadd.f32 %v1929_v31, %v1881_v29 }
 0x298   : > { %v2328_v32 = vadd.f32 0.5, %v2216_v33  ;;  %v1782_v34 = vpop.f32.mrf.mxu2 }
 0x299   : > { %v3420_v43 = vpop.eup %3419  ;;  %v2007_v28 = vmul.f32 0.5, %v1930_v13  ;;  %v1783_v39 = vadd.f32 %v1782_v34, %v4657_v45  ;;  %v1831_v12 = vpop.f32.mrf.mxu3 }
 0x29a   : > { %2441 = vst [vmem:[%s4165_s20 + $0x140] sm:$0xff] %v2328_v32  ;;  %v2224_v40 = vmul.f32 0.5, %v3420_v43 }
 0x29b   : > { %3423 = vtanh.f32 %v2007_v28  ;;  %v1832_v41 = vadd.f32 %v1831_v12, %v1783_v39 }
 0x29c   : > { %v2336_v11 = vadd.f32 0.5, %v2224_v40  ;;  %v1883_v42 = vpop.f32.mrf.mxu0 }
 0x29d   : > { %v3422_v0 = vpop.eup %3421  ;;  %v2006_v44 = vmul.f32 0.5, %v1832_v41  ;;  %v1884_v46 = vadd.f32 %v1883_v42, %v4652_v37  ;;  %v1932_v47 = vpop.f32.mrf.mxu1 }
 0x29e   : > { %2449 = vst.msk [vmem:[%s4165_s20 + $0x180] sm:$0xff] %vm2406_vm0, %v2336_v11  ;;  %v2223_v52 = vmul.f32 0.5, %v3422_v0 }
 0x29f   : > { %3425 = vtanh.f32 %v2006_v44  ;;  %v1933_v48 = vadd.f32 %v1932_v47, %v1884_v46 }
 0x2a0   : > { %v2335_v55 = vadd.f32 0.5, %v2223_v52  ;;  %v1785_v51 = vpop.f32.mrf.mxu2 }
 0x2a1   : > { %v3424_v35 = vpop.eup %3423  ;;  %v2014_v61 = vmul.f32 0.5, %v1933_v48  ;;  %v1786_v59 = vadd.f32 %v1785_v51, %v4657_v45  ;;  %v1834_v6 = vpop.f32.mrf.mxu3 }
 0x2a2   : > { %2448 = vst [vmem:[%s4165_s20 + $0x178] sm:$0xff] %v2335_v55  ;;  %v2231_v1 = vmul.f32 0.5, %v3424_v35 }
 0x2a3   : > { %3427 = vtanh.f32 %v2014_v61  ;;  %v1835_v62 = vadd.f32 %v1834_v6, %v1786_v59 }
 0x2a4   : > { %v2343_v8 = vadd.f32 0.5, %v2231_v1  ;;  %v1885_v2 = vpop.f32.mrf.mxu0 }
 0x2a5   : > { %v3426_v57 = vpop.eup %3425  ;;  %v2013_v30 = vmul.f32 0.5, %v1835_v62  ;;  %v1886_v36 = vadd.f32 %v1885_v2, %v4652_v37  ;;  %v1934_v38 = vpop.f32.mrf.mxu1 }
 0x2a6   : > { %2456 = vst.msk [vmem:[%s4165_s20 + $0x1b8] sm:$0xff] %vm2406_vm0, %v2343_v8  ;;  %v2230_v58 = vmul.f32 0.5, %v3426_v57 }
 0x2a7   : > { %3429 = vtanh.f32 %v2013_v30  ;;  %v1935_v3 = vadd.f32 %v1934_v38, %v1886_v36 }
 0x2a8   : > { %v2342_v9 = vadd.f32 0.5, %v2230_v58  ;;  %v1787_v49 = vpop.f32.mrf.mxu2 }
 0x2a9   : > { %v3428_v16 = vpop.eup %3427  ;;  %v2021_v17 = vmul.f32 0.5, %v1935_v3  ;;  %v1788_v60 = vadd.f32 %v1787_v49, %v4657_v45  ;;  %v1836_v14 = vpop.f32.mrf.mxu3 }
 0x2aa   : > { %2455 = vst [vmem:[%s4165_s20 + $0x1b0] sm:$0xff] %v2342_v9  ;;  %v2238_v4 = vmul.f32 0.5, %v3428_v16 }
 0x2ab   : > { %3431 = vtanh.f32 %v2021_v17  ;;  %v1837_v19 = vadd.f32 %v1836_v14, %v1788_v60 }
 0x2ac   : > { %v2350_v54 = vadd.f32 0.5, %v2238_v4  ;;  %v1888_v20 = vpop.f32.mrf.mxu0 }
 0x2ad   : > { %v3430_v56 = vpop.eup %3429  ;;  %v2020_v24 = vmul.f32 0.5, %v1837_v19  ;;  %v1889_v25 = vadd.f32 %v1888_v20, %v4652_v37  ;;  %v1937_v26 = vpop.f32.mrf.mxu1 }
 0x2ae   : > { %2463 = vst.msk [vmem:[%s4165_s20 + $0x1f0] sm:$0xff] %vm2406_vm0, %v2350_v54  ;;  %v2237_v63 = vmul.f32 0.5, %v3430_v56 }
 0x2af   : > { %3433 = vtanh.f32 %v2020_v24  ;;  %v1938_v7 = vadd.f32 %v1937_v26, %v1889_v25 }
 0x2b0   : > { %v2349_v10 = vadd.f32 0.5, %v2237_v63  ;;  %v1790_v21 = vpop.f32.mrf.mxu2 }
 0x2b1   : > { %v3432_v15 = vpop.eup %3431  ;;  %v2028_v23 = vmul.f32 0.5, %v1938_v7  ;;  %v1791_v18 = vadd.f32 %v1790_v21, %v4657_v45  ;;  %v1839_v22 = vpop.f32.mrf.mxu3 }
 0x2b2   : > { %2462 = vst [vmem:[%s4165_s20 + $0x1e8] sm:$0xff] %v2349_v10  ;;  %v2245_v50 = vmul.f32 0.5, %v3432_v15 }
 0x2b3   : > { %3435 = vtanh.f32 %v2028_v23  ;;  %v1840_v27 = vadd.f32 %v1839_v22, %v1791_v18 }
 0x2b4   : > { %v2357_v53 = vadd.f32 0.5, %v2245_v50  ;;  %v1890_v5 = vpop.f32.mrf.mxu0 }
 0x2b5   : > { %v3434_v29 = vpop.eup %3433  ;;  %v2027_v31 = vmul.f32 0.5, %v1840_v27  ;;  %v1891_v33 = vadd.f32 %v1890_v5, %v4652_v37  ;;  %v1939_v13 = vpop.f32.mrf.mxu1 }
 0x2b6   : > { %2470 = vst.msk [vmem:[%s4165_s20 + $0x228] sm:$0xff] %vm2406_vm0, %v2357_v53  ;;  %v2244_v32 = vmul.f32 0.5, %v3434_v29 }
 0x2b7   : > { %3437 = vtanh.f32 %v2027_v31  ;;  %v1940_v34 = vadd.f32 %v1939_v13, %v1891_v33 }
 0x2b8   : > { %v2356_v43 = vadd.f32 0.5, %v2244_v32  ;;  %v1792_v28 = vpop.f32.mrf.mxu2 }
 0x2b9   : > { %v3436_v39 = vpop.eup %3435  ;;  %v2035_v12 = vmul.f32 0.5, %v1940_v34  ;;  %v1793_v40 = vadd.f32 %v1792_v28, %v4657_v45  ;;  %v1841_v41 = vpop.f32.mrf.mxu3 }
 0x2ba   : > { %2469 = vst [vmem:[%s4165_s20 + $0x220] sm:$0xff] %v2356_v43  ;;  %v2252_v11 = vmul.f32 0.5, %v3436_v39 }
 0x2bb   : > { %3439 = vtanh.f32 %v2035_v12  ;;  %v1842_v42 = vadd.f32 %v1841_v41, %v1793_v40 }
 0x2bc   : > { %v2364_v0 = vadd.f32 0.5, %v2252_v11  ;;  %v1893_v44 = vpop.f32.mrf.mxu0 }
 0x2bd   : > { %v3438_v46 = vpop.eup %3437  ;;  %v2034_v47 = vmul.f32 0.5, %v1842_v42  ;;  %v1894_v52 = vadd.f32 %v1893_v44, %v4652_v37  ;;  %v1942_v48 = vpop.f32.mrf.mxu1 }
 0x2be   : > { %2477 = vst.msk [vmem:[%s4165_s20 + $0x260] sm:$0xff] %vm2406_vm0, %v2364_v0  ;;  %v2251_v55 = vmul.f32 0.5, %v3438_v46 }
 0x2bf   : > { %3441 = vtanh.f32 %v2034_v47  ;;  %v1943_v51 = vadd.f32 %v1942_v48, %v1894_v52 }
 0x2c0   : > { %v2363_v35 = vadd.f32 0.5, %v2251_v55  ;;  %v1795_v61 = vpop.f32.mrf.mxu2 }
 0x2c1   : > { %v3440_v59 = vpop.eup %3439  ;;  %v2042_v6 = vmul.f32 0.5, %v1943_v51  ;;  %v1796_v1 = vadd.f32 %v1795_v61, %v4657_v45  ;;  %v1844_v62 = vpop.f32.mrf.mxu3 }
 0x2c2   : > { %2476 = vst [vmem:[%s4165_s20 + $0x258] sm:$0xff] %v2363_v35  ;;  %v2259_v8 = vmul.f32 0.5, %v3440_v59 }
 0x2c3   : > { %3443 = vtanh.f32 %v2042_v6  ;;  %v1845_v2 = vadd.f32 %v1844_v62, %v1796_v1 }
 0x2c4   : > { %v2371_v57 = vadd.f32 0.5, %v2259_v8  ;;  %v1895_v30 = vpop.f32.mrf.mxu0 }
 0x2c5   : > { %v3442_v36 = vpop.eup %3441  ;;  %v2041_v38 = vmul.f32 0.5, %v1845_v2  ;;  %v1896_v58 = vadd.f32 %v1895_v30, %v4652_v37  ;;  %v1944_v3 = vpop.f32.mrf.mxu1 }
 0x2c6   : > { %2484 = vst.msk [vmem:[%s4165_s20 + $0x298] sm:$0xff] %vm2406_vm0, %v2371_v57  ;;  %v2258_v9 = vmul.f32 0.5, %v3442_v36 }
 0x2c7   : > { %3445 = vtanh.f32 %v2041_v38  ;;  %v1945_v49 = vadd.f32 %v1944_v3, %v1896_v58 }
 0x2c8   : > { %v2370_v16 = vadd.f32 0.5, %v2258_v9  ;;  %v1797_v17 = vpop.f32.mrf.mxu2 }
 0x2c9   : > { %v3444_v60 = vpop.eup %3443  ;;  %v2049_v14 = vmul.f32 0.5, %v1945_v49  ;;  %v1798_v4 = vadd.f32 %v1797_v17, %v4657_v45  ;;  %v1846_v19 = vpop.f32.mrf.mxu3 }
 0x2ca   : > { %2483 = vst [vmem:[%s4165_s20 + $0x290] sm:$0xff] %v2370_v16  ;;  %v2266_v54 = vmul.f32 0.5, %v3444_v60 }
 0x2cb   : > { %3447 = vtanh.f32 %v2049_v14  ;;  %v1847_v20 = vadd.f32 %v1846_v19, %v1798_v4 }
 0x2cc   : > { %v2378_v56 = vadd.f32 0.5, %v2266_v54  ;;  %v1898_v24 = vpop.f32.mrf.mxu0 }
 0x2cd   : > { %v3446_v25 = vpop.eup %3445  ;;  %v2048_v26 = vmul.f32 0.5, %v1847_v20  ;;  %v1899_v63 = vadd.f32 %v1898_v24, %v4652_v37  ;;  %v1947_v7 = vpop.f32.mrf.mxu1 }
 0x2ce   : > { %2491 = vst.msk [vmem:[%s4165_s20 + $0x2d0] sm:$0xff] %vm2406_vm0, %v2378_v56  ;;  %v2265_v10 = vmul.f32 0.5, %v3446_v25 }
 0x2cf   : > { %3449 = vtanh.f32 %v2048_v26  ;;  %v1948_v21 = vadd.f32 %v1947_v7, %v1899_v63 }
 0x2d0   : > { %v2377_v15 = vadd.f32 0.5, %v2265_v10  ;;  %v1800_v23 = vpop.f32.mrf.mxu2 }
 0x2d1   : > { %v3448_v18 = vpop.eup %3447  ;;  %v2056_v22 = vmul.f32 0.5, %v1948_v21  ;;  %v1801_v50 = vadd.f32 %v1800_v23, %v4657_v45  ;;  %v1849_v27 = vpop.f32.mrf.mxu3 }
 0x2d2   : > { %2490 = vst [vmem:[%s4165_s20 + $0x2c8] sm:$0xff] %v2377_v15  ;;  %v2273_v53 = vmul.f32 0.5, %v3448_v18 }
 0x2d3   : > { %3451 = vtanh.f32 %v2056_v22  ;;  %v1850_v5 = vadd.f32 %v1849_v27, %v1801_v50 }
 0x2d4   : > { %v2385_v29 = vadd.f32 0.5, %v2273_v53  ;;  %v1900_v31 = vpop.f32.mrf.mxu0 }
 0x2d5   : > { %v3450_v33 = vpop.eup %3449  ;;  %v2055_v13 = vmul.f32 0.5, %v1850_v5  ;;  %v1901_v32 = vadd.f32 %v1900_v31, %v4652_v37  ;;  %v1949_v43 = vpop.f32.mrf.mxu1 }
 0x2d6   : > { %2498 = vst.msk [vmem:[%s4165_s20 + $0x308] sm:$0xff] %vm2406_vm0, %v2385_v29  ;;  %v2272_v34 = vmul.f32 0.5, %v3450_v33 }
 0x2d7   : > { %3453 = vtanh.f32 %v2055_v13  ;;  %v1950_v28 = vadd.f32 %v1949_v43, %v1901_v32 }
 0x2d8   : > { %v2384_v39 = vadd.f32 0.5, %v2272_v34  ;;  %v1802_v12 = vpop.f32.mrf.mxu2 }
 0x2d9   : > { %v3452_v40 = vpop.eup %3451  ;;  %v2063_v41 = vmul.f32 0.5, %v1950_v28  ;;  %v1803_v11 = vadd.f32 %v1802_v12, %v4657_v45  ;;  %v1851_v0 = vpop.f32.mrf.mxu3 }
 0x2da   : > { %2497 = vst [vmem:[%s4165_s20 + $0x300] sm:$0xff] %v2384_v39  ;;  %v2280_v42 = vmul.f32 0.5, %v3452_v40 }
 0x2db   : > { %3455 = vtanh.f32 %v2063_v41  ;;  %v1852_v37 = vadd.f32 %v1851_v0, %v1803_v11 }
 0x2dc   : > { %v2392_v44 = vadd.f32 0.5, %v2280_v42 }
 0x2dd   : > { %v3454_v46 = vpop.eup %3453  ;;  %v2062_v47 = vmul.f32 0.5, %v1852_v37 }
 0x2de   : > { %2505 = vst.msk [vmem:[%s4165_s20 + $0x340] sm:$0xff] %vm2406_vm0, %v2392_v44  ;;  %v2279_v52 = vmul.f32 0.5, %v3454_v46 }
 0x2df   : > { %3457 = vtanh.f32 %v2062_v47 }
 0x2e0   : > { %v2391_v48 = vadd.f32 0.5, %v2279_v52 }
 0x2e1   : > { %v3456_v55 = vpop.eup %3455 }
 0x2e2   : > { %2504 = vst [vmem:[%s4165_s20 + $0x338] sm:$0xff] %v2391_v48  ;;  %v2287_v51 = vmul.f32 0.5, %v3456_v55 }
 0x2e4   : > { %v2399_v35 = vadd.f32 0.5, %v2287_v51 }
 0x2e5   : > { %v3458_v45 = vpop.eup %3457 }
 0x2e6   : > { %2512 = vst.msk [vmem:[%s4165_s20 + $0x378] sm:$0xff] %vm2406_vm0, %v2399_v35  ;;  %v2286_v61 = vmul.f32 0.5, %v3458_v45 }
 0x2e8   : > { %v2398_v59 = vadd.f32 0.5, %v2286_v61 }
 0x2ea   : > { %2511 = vst [vmem:[%s4165_s20 + $0x370] sm:$0xff] %v2398_v59 }
 0x2eb PF: > { %s15_s18 = sadd.s32 1, %s3466_s18  }
 0x2ec   : > { %p12_p4 = scmp.ge.s32.totalorder %s15_s18, 4  }
 0x2ee   :  { %14 = sbr.rel (!%p12_p4) target bundleno = 1 (0x1), region = 70 }

</bundles_post_ra>
